<compile_context>
chip_gen: v5e
topology: v5e:2x2
jax: 0.10.0
libtpu: 0.0.40
codegen_flags: <defaults>
</compile_context>

<pallas_src>
import functools

import jax
import jax.numpy as jnp
import numpy as np
from jax import lax
from jax.experimental import pallas as pl
from jax.experimental.pallas import tpu as pltpu

LN_EPS = 1e-5  # torch.nn.LayerNorm default
HIGHEST = jax.lax.Precision.HIGHEST


# ----------------------------------------------------------------------------
# Shared helpers
# ----------------------------------------------------------------------------
def _layernorm(y, gamma, beta):
    mean = jnp.mean(y, axis=-1, keepdims=True)
    var = jnp.mean((y - mean) ** 2, axis=-1, keepdims=True)
    return (y - mean) * lax.rsqrt(var + LN_EPS) * gamma + beta


# ----------------------------------------------------------------------------
# Fused decoder kernel: grid = (batch_block, layer).  The activation is
# carried across the layer axis in a VMEM scratch; only the last layer stores.
# ----------------------------------------------------------------------------
def _decoder_kernel(x0_ref, enc_ref, sbias_ref, cbias_ref,
                    wattn_ref, wffn_ref, vec_ref, fc1b_ref,
                    out_ref, dec_ref, *, n_heads, compute_dtype):
    layer = pl.program_id(1)

    @pl.when(layer == 0)
    def _init():
        dec_ref[...] = x0_ref[...]            # embedded tgt + positional enc

    bb, Lq, D = dec_ref.shape
    d_k = D // n_heads
    scale = 1.0 / float(np.sqrt(d_k))

    # ---- packed per-layer weights (static slices of the packed slabs) ------
    wq1 = wattn_ref[0, 0 * D:1 * D, :]        # self-attn W_Q (= W_K = W_V quirk)
    wfc1 = wattn_ref[0, 1 * D:2 * D, :]       # self-attn output projection
    wq2 = wattn_ref[0, 2 * D:3 * D, :]        # cross-attn W_Q
    wfc2 = wattn_ref[0, 3 * D:4 * D, :]       # cross-attn output projection
    w1 = wffn_ref[0, 0:D, :]                  # fc1 weight    (D, F)
    w2t = wffn_ref[0, D:2 * D, :]             # fc2 weight^T  (D, F)
    g1, b1 = vec_ref[0, 0:1, :], vec_ref[0, 1:2, :]
    g2, b2 = vec_ref[0, 2:3, :], vec_ref[0, 3:4, :]
    gf, bf = vec_ref[0, 4:5, :], vec_ref[0, 5:6, :]
    fc2_b = vec_ref[0, 6:7, :]
    fc1_b = fc1b_ref[0]                       # (1, F)

    x = dec_ref[...]                          # (bb, Lq, D) f32 carried act
    enc = enc_ref[...]                        # (bb, Lk, D) f32

    def mm(a, b):                             # 2-D matmul, f32 accumulate
        return jnp.dot(a.astype(compute_dtype), b.astype(compute_dtype),
                       preferred_element_type=jnp.float32)

    def mm_tb(a, bt):                         # a @ bt.T (contract last dims)
        return lax.dot_general(a.astype(compute_dtype), bt.astype(compute_dtype),
                               (((1,), (1,)), ((), ())),
                               preferred_element_type=jnp.float32)

    def mha(q_in, kv_in, bias, wq_w, wfc_w, *, self_attn):
        """Multi-head attention with the output projection fused into the
        per-head loop (lane-dense (M, D) accumulation, no ctx scratch)."""
        Lkk = kv_in.shape[1]
        q_proj = mm(q_in.reshape(bb * Lq, D), wq_w).reshape(bb, Lq, D)
        # Reference-module quirk: Q, K and V all use W_Q, so K == V (and
        # == Q for self-attention) -> project once.
        kv_proj = q_proj if self_attn else \
            mm(kv_in.reshape(bb * Lkk, D), wq_w).reshape(bb, Lkk, D)
        proj = jnp.zeros((bb * Lq, D), jnp.float32)
        for h in range(n_heads):
            sl = slice(h * d_k, (h + 1) * d_k)
            qh = q_proj[:, :, sl].astype(compute_dtype)
            kh = kv_proj[:, :, sl].astype(compute_dtype)
            s = jnp.einsum("bqd,bkd->bqk", qh, kh,
                           preferred_element_type=jnp.float32)
            s = s * scale + bias              # additive mask bias (hoisted)
            s = s - jnp.max(s, axis=-1, keepdims=True)
            e = jnp.exp(s)
            attn = e / jnp.sum(e, axis=-1, keepdims=True)   # exact softmax
            ctx = jnp.einsum("bqk,bkd->bqd", attn.astype(compute_dtype), kh,
                             preferred_element_type=jnp.float32)
            # fused output projection (accumulated in f32, lane-dense)
            proj = proj + mm(ctx.reshape(bb * Lq, d_k), wfc_w[sl, :])
        return proj.reshape(bb, Lq, D)

    # --- self-attention: Q = K = V = x @ W_Q ---------------------------------
    x = _layernorm(x + mha(x, x, sbias_ref[...], wq1, wfc1, self_attn=True),
                   g1, b1)
    # --- cross-attention: Q = x @ W_Q ; K = V = enc @ W_Q --------------------
    x = _layernorm(x + mha(x, enc, cbias_ref[...], wq2, wfc2, self_attn=False),
                   g2, b2)
    # --- position-wise FFN ----------------------------------------------------
    xf = x.reshape(bb * Lq, D)
    h = jnp.maximum(mm(xf, w1) + fc1_b, 0.0)
    o = mm_tb(h, w2t) + fc2_b
    x = _layernorm((o + xf).reshape(bb, Lq, D), gf, bf)

    dec_ref[...] = x                          # carry to next layer

    @pl.when(layer == pl.num_programs(1) - 1)
    def _finish():
        out_ref[...] = x


# ----------------------------------------------------------------------------
# Wrapper
# ----------------------------------------------------------------------------
def _choose_block_b(batch, target=8):
    """Largest divisor of `batch` that is <= target while leaving >= 2 batch
    blocks (keeps both v7x TensorCores busy); falls back gracefully."""
    divs = [d for d in range(1, batch + 1) if batch % d == 0]
    cand = [d for d in divs if d <= target and batch // d >= 2]
    if cand:
        return max(cand)
    cand = [d for d in divs if d <= target]
    return max(cand) if cand else 1


def decoder_forward(params, enc_out, dec_in, dec_mask, dec_enc_mask, n_heads,
                    *, compute_dtype=jnp.bfloat16, block_b=8):
    # Embedding gather + positional add is cheap glue left to XLA; the hot
    # path (every decoder layer) is a single pallas_call.
    tgt_emb = jnp.take(params["tgt_emb"], dec_in, axis=0)           # (B, Lq, D)
    pos_emb = params["pos_enc"][: dec_in.shape[1]]                  # (Lq, D)
    x0 = (tgt_emb + pos_emb[None, :, :]).astype(jnp.float32)        # dropout=id

    st = params["stacked"]
    B, Lq, D = x0.shape
    Lk = enc_out.shape[1]
    n_layers = st["w_attn"].shape[0]
    F = st["fc1_b"].shape[-1]

    bb = _choose_block_b(B, block_b)
    nb = B // bb

    # Masks -> additive score bias (0 keep / -1e4 masked), computed once.
    # For partially masked rows this is numerically identical to torch's
    # masked_fill_(-1e4); fully-masked rows are degenerate in both forms.
    sbias = dec_mask.astype(jnp.float32) * -10000.0                 # (B, Lq, Lq)
    cbias = dec_enc_mask.astype(jnp.float32) * -10000.0             # (B, Lq, Lk)

    # Matmul weights stored/fed in compute_dtype (bf16 halves weight HBM
    # traffic); LayerNorm/bias vectors stay f32.
    # TODO(synk): fp8 weight storage with per-tensor scales for the v7x path.
    w_attn = st["w_attn"].astype(compute_dtype)                     # (L, 4D, D)
    w_ffn = st["w_ffn"].astype(compute_dtype)                       # (L, 2D, F)
    vec_d = st["vec_d"].astype(jnp.float32)                         # (L, 8, D)
    fc1_b = st["fc1_b"].astype(jnp.float32)                         # (L, 1, F)

    batch_map = lambda b, l: (b, 0, 0)
    layer_map = lambda b, l: (l, 0, 0)
    # TODO(synk): on v5e/v6e (128 MiB VMEM) make the weight stack fully VMEM
    # resident (full-stack blocks + constant index_map) when it fits, so
    # weights are DMA'd once per call instead of once per (batch block, layer).
    in_specs = [
        pl.BlockSpec((bb, Lq, D), batch_map),       # x0 (embedded tgt)
        pl.BlockSpec((bb, Lk, D), batch_map),       # enc_out
        pl.BlockSpec((bb, Lq, Lq), batch_map),      # self-attn bias
        pl.BlockSpec((bb, Lq, Lk), batch_map),      # cross-attn bias
        pl.BlockSpec((1, 4 * D, D), layer_map),     # [wq1; wfc1; wq2; wfc2]
        pl.BlockSpec((1, 2 * D, F), layer_map),     # [fc1_w; fc2_w^T]
        pl.BlockSpec((1, 8, D), layer_map),         # LN gammas/betas + fc2_b
        pl.BlockSpec((1, 1, F), layer_map),         # fc1_b
    ]
    out_spec = pl.BlockSpec((bb, Lq, D), batch_map)

    # Explicit VMEM budget from the real (double-buffered) block sizes.
    def _nbytes(shape, dt):
        return int(np.prod(shape)) * np.dtype(dt).itemsize

    blk_bytes = (
        _nbytes((bb, Lq, D), jnp.float32) + _nbytes((bb, Lk, D), jnp.float32)
        + _nbytes((bb, Lq, Lq), jnp.float32) + _nbytes((bb, Lq, Lk), jnp.float32)
        + _nbytes((1, 4 * D, D), compute_dtype)
        + _nbytes((1, 2 * D, F), compute_dtype)
        + _nbytes((1, 8, D), jnp.float32) + _nbytes((1, 1, F), jnp.float32)
        + _nbytes((bb, Lq, D), jnp.float32))        # output block
    vmem_limit = int(min(max(2 * blk_bytes + _nbytes((bb, Lq, D), jnp.float32)
                             + (4 << 20), 16 << 20), 96 << 20))

    kern = functools.partial(_decoder_kernel, n_heads=n_heads,
                             compute_dtype=compute_dtype)
    return pl.pallas_call(
        kern,
        out_shape=jax.ShapeDtypeStruct((B, Lq, D), jnp.float32),
        grid=(nb, n_layers),
        in_specs=in_specs,
        out_specs=out_spec,
        scratch_shapes=[pltpu.VMEM((bb, Lq, D), jnp.float32)],      # carried act
        compiler_params=pltpu.CompilerParams(
            dimension_semantics=("parallel", "arbitrary"),
            vmem_limit_bytes=vmem_limit),
    )(x0, enc_out.astype(jnp.float32), sbias, cbias, w_attn, w_ffn, vec_d, fc1_b)


# ----------------------------------------------------------------------------
# Parameters (deterministic synthetic init, shapes match the torch module)
# ----------------------------------------------------------------------------
def positional_encode(max_seq_len, d_model):
    i = jnp.arange(d_model, dtype=jnp.float32)
    pos = jnp.arange(max_seq_len, dtype=jnp.float32)[:, None]
    angle = pos / jnp.power(10000.0, 2.0 * i / d_model)
    even = (jnp.arange(d_model) % 2 == 0)[None, :]
    return jnp.where(even, jnp.sin(angle), jnp.cos(angle)).astype(jnp.float32)


def init_params(key, n_layers, d_model, n_heads, dff, tgt_len, tgt_vocab):
    d_k = d_model // n_heads
    keys = jax.random.split(key, 1 + n_layers)
    params = {
        "tgt_emb": jax.random.normal(keys[0], (tgt_vocab, d_model), jnp.float32),
        "pos_enc": positional_encode(tgt_len, d_model),
        "layers": [],
    }
    std_qk = float(np.sqrt(2.0 / (d_model + d_k)))
    lim1 = 1.0 / float(np.sqrt(d_model))
    lim2 = 1.0 / float(np.sqrt(dff))
    for l in range(n_layers):
        k = jax.random.split(keys[1 + l], 8)
        layer = dict(
            attn1_wq=std_qk * jax.random.normal(k[0], (d_model, d_model), jnp.float32),
            attn1_fc=std_qk * jax.random.normal(k[1], (d_model, d_model), jnp.float32),
            attn1_g=jnp.ones((1, d_model), jnp.float32),
            attn1_b=jnp.zeros((1, d_model), jnp.float32),
            attn2_wq=std_qk * jax.random.normal(k[2], (d_model, d_model), jnp.float32),
            attn2_fc=std_qk * jax.random.normal(k[3], (d_model, d_model), jnp.float32),
            attn2_g=jnp.ones((1, d_model), jnp.float32),
            attn2_b=jnp.zeros((1, d_model), jnp.float32),
            fc1_w=jax.random.uniform(k[4], (d_model, dff), jnp.float32, -lim1, lim1),
            fc1_b=jax.random.uniform(k[5], (1, dff), jnp.float32, -lim1, lim1),
            fc2_w=jax.random.uniform(k[6], (dff, d_model), jnp.float32, -lim2, lim2),
            fc2_b=jax.random.uniform(k[7], (1, d_model), jnp.float32, -lim2, lim2),
            ffn_g=jnp.ones((1, d_model), jnp.float32),
            ffn_b=jnp.zeros((1, d_model), jnp.float32),
        )
        params["layers"].append(layer)

    # Pack the 14 per-layer tensors into 4 stacked slabs (fewer, larger DMAs).
    pad = jnp.zeros((1, d_model), jnp.float32)
    params["stacked"] = {
        "w_attn": jnp.stack([jnp.concatenate(
            [L["attn1_wq"], L["attn1_fc"], L["attn2_wq"], L["attn2_fc"]],
            axis=0) for L in params["layers"]]),                    # (L, 4D, D)
        "w_ffn": jnp.stack([jnp.concatenate(
            [L["fc1_w"], L["fc2_w"].T], axis=0)
            for L in params["layers"]]),                            # (L, 2D, F)
        "vec_d": jnp.stack([jnp.concatenate(
            [L["attn1_g"], L["attn1_b"], L["attn2_g"], L["attn2_b"],
             L["ffn_g"], L["ffn_b"], L["fc2_b"], pad], axis=0)
            for L in params["layers"]]),                            # (L, 8, D)
        "fc1_b": jnp.stack([L["fc1_b"] for L in params["layers"]]),  # (L, 1, F)
    }
    return params


# ----------------------------------------------------------------------------
# Pure-JAX reference (mirrors the torch forward; HIGHEST-precision matmuls)
# ----------------------------------------------------------------------------
def _ref_mha(xq, xkv, mask, wq, wfc, g, b, n_heads):
    B, Lq, D = xq.shape
    d_k = D // n_heads
    Q = jnp.dot(xq, wq, precision=HIGHEST).reshape(B, Lq, n_heads, d_k).transpose(0, 2, 1, 3)
    K = jnp.dot(xkv, wq, precision=HIGHEST).reshape(B, -1, n_heads, d_k).transpose(0, 2, 1, 3)
    V = jnp.dot(xkv, wq, precision=HIGHEST).reshape(B, -1, n_heads, d_k).transpose(0, 2, 1, 3)
    s = jnp.einsum("bhqd,bhkd->bhqk", Q, K, precision=HIGHEST) / np.sqrt(d_k)
    s = jnp.where(mask[:, None] > 0, -10000.0, s)
    a = jax.nn.softmax(s, axis=-1)
    ctx = jnp.einsum("bhqk,bhkd->bhqd", a, V,
                     precision=HIGHEST).transpose(0, 2, 1, 3).reshape(B, Lq, D)
    return _layernorm(xq + jnp.dot(ctx, wfc, precision=HIGHEST), g, b)


def _ref_ffn(x, w1, b1, w2, b2, g, b):
    h = jnp.maximum(jnp.dot(x, w1, precision=HIGHEST) + b1, 0.0)
    o = jnp.dot(h, w2, precision=HIGHEST) + b2
    return _layernorm(o + x, g, b)


def ref_decoder_forward(params, enc_out, dec_in, dec_mask, dec_enc_mask, n_heads):
    dec_out = jnp.take(params["tgt_emb"], dec_in, axis=0) + \
        params["pos_enc"][: dec_in.shape[1]][None]
    for L in params["layers"]:
        dec_out = _ref_mha(dec_out, dec_out, dec_mask, L["attn1_wq"], L["attn1_fc"],
                           L["attn1_g"], L["attn1_b"], n_heads)
        dec_out = _ref_mha(dec_out, enc_out, dec_enc_mask, L["attn2_wq"], L["attn2_fc"],
                           L["attn2_g"], L["attn2_b"], n_heads)
        dec_out = _ref_ffn(dec_out, L["fc1_w"], L["fc1_b"], L["fc2_w"], L["fc2_b"],
                           L["ffn_g"], L["ffn_b"])
    return dec_out


def _round_matmul_weights(layers, dtype):
    """Round the matmul weights to `dtype` (and back to f32) so the bf16
    kernel path can be compared against a weight-matched reference."""
    names = ("attn1_wq", "attn1_fc", "attn2_wq", "attn2_fc", "fc1_w", "fc2_w")
    return [{k: (v.astype(dtype).astype(jnp.float32) if k in names else v)
             for k, v in L.items()} for L in layers]


if __name__ == "__main__":
    B, L_tgt, L_enc = 4, 8, 8
    d_model, n_heads, dff = 32, 4, 64
    n_layers = 2
    tgt_len_max, tgt_vocab = 16, 50

    key = jax.random.PRNGKey(0)
    kp, ke, kd = jax.random.split(key, 3)
    params = init_params(kp, n_layers, d_model, n_heads, dff, tgt_len_max, tgt_vocab)

    enc_out = jax.random.normal(ke, (B, L_enc, d_model), jnp.float32)
    dec_in = jax.random.randint(kd, (B, L_tgt), 0, tgt_vocab)
    # causal self-attention mask (1.0 = masked) and empty cross-attention mask
    causal = (jnp.arange(L_tgt)[None, :] > jnp.arange(L_tgt)[:, None]).astype(jnp.float32)
    dec_mask = jnp.tile(causal[None], (B, 1, 1))
    dec_enc_mask = jnp.zeros((B, L_tgt, L_enc), jnp.float32)

    # --- f32 datapath vs. high-precision reference ---------------------------
    out_f32 = decoder_forward(params, enc_out, dec_in, dec_mask, dec_enc_mask,
                              n_heads, compute_dtype=jnp.float32)
    out_f32 = jax.block_until_ready(out_f32)
    ref_f32 = ref_decoder_forward(params, enc_out, dec_in, dec_mask, dec_enc_mask,
                                  n_heads)
    assert out_f32.shape == (B, L_tgt, d_model)
    # tolerance covers differences between XLA's and Mosaic's f32 MXU pass
    # decompositions (the kernel itself uses exact softmax, f32 accumulation)
    np.testing.assert_allclose(np.asarray(out_f32), np.asarray(ref_f32),
                               atol=2e-2, rtol=2e-2)

    # --- bf16-weight / bf16-operand datapath (f32 accum, f32 LN/softmax) -----
    out_bf16 = decoder_forward(params, enc_out, dec_in, dec_mask, dec_enc_mask,
                               n_heads, compute_dtype=jnp.bfloat16)
    out_bf16 = jax.block_until_ready(out_bf16)
    params_q = dict(params,
                    layers=_round_matmul_weights(params["layers"], jnp.bfloat16))
    ref_bf16 = ref_decoder_forward(params_q, enc_out, dec_in, dec_mask,
                                   dec_enc_mask, n_heads)
    np.testing.assert_allclose(np.asarray(out_bf16), np.asarray(ref_bf16),
                               atol=1e-1, rtol=1e-1)

    print("KERNEL_OK")
</pallas_src>

<mosaic_0001>
module attributes {stable_mosaic.version = 11 : i64} {
  func.func @_decoder_kernel(%arg0: i32, %arg1: i32, %arg2: memref<2x8x32xf32, #tpu.memory_space<vmem>>, %arg3: memref<2x8x32xf32, #tpu.memory_space<vmem>>, %arg4: memref<2x8x8xf32, #tpu.memory_space<vmem>>, %arg5: memref<2x8x8xf32, #tpu.memory_space<vmem>>, %arg6: memref<1x128x32xf32, #tpu.memory_space<vmem>>, %arg7: memref<1x64x64xf32, #tpu.memory_space<vmem>>, %arg8: memref<1x8x32xf32, #tpu.memory_space<vmem>>, %arg9: memref<1x1x64xf32, #tpu.memory_space<vmem>>, %arg10: memref<2x8x32xf32, #tpu.memory_space<vmem>>, %arg11: memref<2x8x32xf32, #tpu.memory_space<vmem>>) attributes {dimension_semantics = [#tpu.dimension_semantics<parallel>, #tpu.dimension_semantics<arbitrary>], iteration_bounds = array<i64: 2, 2>, scalar_prefetch = 0 : i64, scratch_operands = 1 : i64, tpu.core_type = #tpu.core_type<tc>, window_params = [{transform_indices = @transform_0, window_bounds = array<i64: 2, 8, 32>}, {transform_indices = @transform_1, window_bounds = array<i64: 2, 8, 32>}, {transform_indices = @transform_2, window_bounds = array<i64: 2, 8, 8>}, {transform_indices = @transform_3, window_bounds = array<i64: 2, 8, 8>}, {transform_indices = @transform_4, window_bounds = array<i64: 1, 128, 32>}, {transform_indices = @transform_5, window_bounds = array<i64: 1, 64, 64>}, {transform_indices = @transform_6, window_bounds = array<i64: 1, 8, 32>}, {transform_indices = @transform_7, window_bounds = array<i64: 1, 1, 64>}, {transform_indices = @transform_8, window_bounds = array<i64: 2, 8, 32>}]} {
    %c0_i32 = arith.constant 0 : i32
    %0 = arith.cmpi eq, %arg1, %c0_i32 : i32
    %1 = arith.extui %0 : i1 to i32
    %c0_i32_0 = arith.constant 0 : i32
    %2 = arith.cmpi ne, %1, %c0_i32_0 : i32
    scf.if %2 {
      %c0_119 = arith.constant 0 : index
      %c0_120 = arith.constant 0 : index
      %c0_121 = arith.constant 0 : index
      %297 = vector.load %arg2[%c0_119, %c0_120, %c0_121] : memref<2x8x32xf32, #tpu.memory_space<vmem>>, vector<2x8x32xf32>
      %c0_122 = arith.constant 0 : index
      %c0_123 = arith.constant 0 : index
      %c0_124 = arith.constant 0 : index
      %298 = vector.load %arg11[%c0_122, %c0_123, %c0_124] : memref<2x8x32xf32, #tpu.memory_space<vmem>>, vector<2x8x32xf32>
      tpu.vector_store %arg11[%c0_122, %c0_123, %c0_124], %297 {strides = array<i32>} : memref<2x8x32xf32, #tpu.memory_space<vmem>>, vector<2x8x32xf32>,
    } else {
    }
    %c0 = arith.constant 0 : index
    %c0_1 = arith.constant 0 : index
    %c0_2 = arith.constant 0 : index
    %3 = vector.load %arg6[%c0, %c0_1, %c0_2] : memref<1x128x32xf32, #tpu.memory_space<vmem>>, vector<1x32x32xf32>
    %4 = vector.shape_cast %3 : vector<1x32x32xf32> to vector<32x32xf32>
    %c0_3 = arith.constant 0 : index
    %c32 = arith.constant 32 : index
    %c0_4 = arith.constant 0 : index
    %5 = vector.load %arg6[%c0_3, %c32, %c0_4] : memref<1x128x32xf32, #tpu.memory_space<vmem>>, vector<1x32x32xf32>
    %6 = vector.shape_cast %5 : vector<1x32x32xf32> to vector<32x32xf32>
    %c0_5 = arith.constant 0 : index
    %c64 = arith.constant 64 : index
    %c0_6 = arith.constant 0 : index
    %7 = vector.load %arg6[%c0_5, %c64, %c0_6] : memref<1x128x32xf32, #tpu.memory_space<vmem>>, vector<1x32x32xf32>
    %8 = vector.shape_cast %7 : vector<1x32x32xf32> to vector<32x32xf32>
    %c0_7 = arith.constant 0 : index
    %c96 = arith.constant 96 : index
    %c0_8 = arith.constant 0 : index
    %9 = vector.load %arg6[%c0_7, %c96, %c0_8] : memref<1x128x32xf32, #tpu.memory_space<vmem>>, vector<1x32x32xf32>
    %10 = vector.shape_cast %9 : vector<1x32x32xf32> to vector<32x32xf32>
    %c0_9 = arith.constant 0 : index
    %c0_10 = arith.constant 0 : index
    %c0_11 = arith.constant 0 : index
    %11 = vector.load %arg7[%c0_9, %c0_10, %c0_11] : memref<1x64x64xf32, #tpu.memory_space<vmem>>, vector<1x32x64xf32>
    %12 = vector.shape_cast %11 : vector<1x32x64xf32> to vector<32x64xf32>
    %c0_12 = arith.constant 0 : index
    %c32_13 = arith.constant 32 : index
    %c0_14 = arith.constant 0 : index
    %13 = vector.load %arg7[%c0_12, %c32_13, %c0_14] : memref<1x64x64xf32, #tpu.memory_space<vmem>>, vector<1x32x64xf32>
    %14 = vector.shape_cast %13 : vector<1x32x64xf32> to vector<32x64xf32>
    %c0_15 = arith.constant 0 : index
    %c0_16 = arith.constant 0 : index
    %c0_17 = arith.constant 0 : index
    %15 = vector.load %arg8[%c0_15, %c0_16, %c0_17] : memref<1x8x32xf32, #tpu.memory_space<vmem>>, vector<1x1x32xf32>
    %16 = vector.shape_cast %15 : vector<1x1x32xf32> to vector<1x32xf32>
    %c0_18 = arith.constant 0 : index
    %c1 = arith.constant 1 : index
    %c0_19 = arith.constant 0 : index
    %17 = vector.load %arg8[%c0_18, %c1, %c0_19] : memref<1x8x32xf32, #tpu.memory_space<vmem>>, vector<1x1x32xf32>
    %18 = vector.shape_cast %17 : vector<1x1x32xf32> to vector<1x32xf32>
    %c0_20 = arith.constant 0 : index
    %c2 = arith.constant 2 : index
    %c0_21 = arith.constant 0 : index
    %19 = vector.load %arg8[%c0_20, %c2, %c0_21] : memref<1x8x32xf32, #tpu.memory_space<vmem>>, vector<1x1x32xf32>
    %20 = vector.shape_cast %19 : vector<1x1x32xf32> to vector<1x32xf32>
    %c0_22 = arith.constant 0 : index
    %c3 = arith.constant 3 : index
    %c0_23 = arith.constant 0 : index
    %21 = vector.load %arg8[%c0_22, %c3, %c0_23] : memref<1x8x32xf32, #tpu.memory_space<vmem>>, vector<1x1x32xf32>
    %22 = vector.shape_cast %21 : vector<1x1x32xf32> to vector<1x32xf32>
    %c0_24 = arith.constant 0 : index
    %c4 = arith.constant 4 : index
    %c0_25 = arith.constant 0 : index
    %23 = vector.load %arg8[%c0_24, %c4, %c0_25] : memref<1x8x32xf32, #tpu.memory_space<vmem>>, vector<1x1x32xf32>
    %24 = vector.shape_cast %23 : vector<1x1x32xf32> to vector<1x32xf32>
    %c0_26 = arith.constant 0 : index
    %c5 = arith.constant 5 : index
    %c0_27 = arith.constant 0 : index
    %25 = vector.load %arg8[%c0_26, %c5, %c0_27] : memref<1x8x32xf32, #tpu.memory_space<vmem>>, vector<1x1x32xf32>
    %26 = vector.shape_cast %25 : vector<1x1x32xf32> to vector<1x32xf32>
    %c0_28 = arith.constant 0 : index
    %c6 = arith.constant 6 : index
    %c0_29 = arith.constant 0 : index
    %27 = vector.load %arg8[%c0_28, %c6, %c0_29] : memref<1x8x32xf32, #tpu.memory_space<vmem>>, vector<1x1x32xf32>
    %28 = vector.shape_cast %27 : vector<1x1x32xf32> to vector<1x32xf32>
    %c0_30 = arith.constant 0 : index
    %c0_31 = arith.constant 0 : index
    %c0_32 = arith.constant 0 : index
    %29 = vector.load %arg9[%c0_30, %c0_31, %c0_32] : memref<1x1x64xf32, #tpu.memory_space<vmem>>, vector<1x1x64xf32>
    %30 = vector.shape_cast %29 : vector<1x1x64xf32> to vector<1x64xf32>
    %c0_33 = arith.constant 0 : index
    %c0_34 = arith.constant 0 : index
    %c0_35 = arith.constant 0 : index
    %31 = vector.load %arg11[%c0_33, %c0_34, %c0_35] : memref<2x8x32xf32, #tpu.memory_space<vmem>>, vector<2x8x32xf32>
    %c0_36 = arith.constant 0 : index
    %c0_37 = arith.constant 0 : index
    %c0_38 = arith.constant 0 : index
    %32 = vector.load %arg3[%c0_36, %c0_37, %c0_38] : memref<2x8x32xf32, #tpu.memory_space<vmem>>, vector<2x8x32xf32>
    %c0_39 = arith.constant 0 : index
    %c0_40 = arith.constant 0 : index
    %c0_41 = arith.constant 0 : index
    %33 = vector.load %arg4[%c0_39, %c0_40, %c0_41] : memref<2x8x8xf32, #tpu.memory_space<vmem>>, vector<2x8x8xf32>
    %34 = vector.shape_cast %31 : vector<2x8x32xf32> to vector<16x32xf32>
    %cst = arith.constant dense<0.000000e+00> : vector<16x32xf32>
    %35 = tpu.matmul %34, %4, %cst {dimension_numbers = #tpu.dot_dimension_numbers<[1], [0], [0], [1], [0, 0, 1, 1], [], []>} : vector<16x32xf32>, vector<32x32xf32>, vector<16x32xf32> -> vector<16x32xf32>
    %36 = vector.shape_cast %35 : vector<16x32xf32> to vector<2x8x32xf32>
    %cst_42 = arith.constant 0.000000e+00 : f32
    %37 = vector.broadcast %cst_42 : f32 to vector<16x32xf32>
    %38 = vector.extract_strided_slice %36 {offsets = [0, 0, 0], sizes = [2, 8, 8], strides = [1, 1, 1]} : vector<2x8x32xf32> to vector<2x8x8xf32>
    %39 = vector.extract_strided_slice %36 {offsets = [0, 0, 0], sizes = [2, 8, 8], strides = [1, 1, 1]} : vector<2x8x32xf32> to vector<2x8x8xf32>
    "tpu.trace_start"() <{level = 10 : i32, message = "bqd,bkd->bqk"}> : () -> ()
    %cst_43 = arith.constant dense<0.000000e+00> : vector<2x8x8xf32>
    %40 = tpu.matmul %38, %39, %cst_43 {dimension_numbers = #tpu.dot_dimension_numbers<[2], [2], [1], [1], [0, 0, 0, 1, 1, 1], [0], [0]>} : vector<2x8x8xf32>, vector<2x8x8xf32>, vector<2x8x8xf32> -> vector<2x8x8xf32>
    "tpu.trace_stop"() : () -> ()
    %cst_44 = arith.constant 0.353553385 : f32
    %41 = vector.broadcast %cst_44 : f32 to vector<2x8x8xf32>
    %42 = arith.mulf %40, %41 : vector<2x8x8xf32>
    %43 = arith.addf %42, %33 : vector<2x8x8xf32>
    %cst_45 = arith.constant dense<0xFF800000> : vector<2x8xf32>
    %44 = vector.multi_reduction <maximumf>, %43, %cst_45 [2] : vector<2x8x8xf32> to vector<2x8xf32>
    %45 = vector.shape_cast %44 : vector<2x8xf32> to vector<2x8x1xf32>
    %46 = vector.broadcast %45 : vector<2x8x1xf32> to vector<2x8x8xf32>
    %47 = arith.subf %43, %46 : vector<2x8x8xf32>
    %48 = math.exp %47 : vector<2x8x8xf32>
    %cst_46 = arith.constant dense<0.000000e+00> : vector<2x8xf32>
    %49 = vector.multi_reduction <add>, %48, %cst_46 [2] : vector<2x8x8xf32> to vector<2x8xf32>
    %50 = vector.shape_cast %49 : vector<2x8xf32> to vector<2x8x1xf32>
    %51 = vector.broadcast %50 : vector<2x8x1xf32> to vector<2x8x8xf32>
    %52 = arith.divf %48, %51 : vector<2x8x8xf32>
    "tpu.trace_start"() <{level = 10 : i32, message = "bqk,bkd->bqd"}> : () -> ()
    %cst_47 = arith.constant dense<0.000000e+00> : vector<2x8x8xf32>
    %53 = tpu.matmul %52, %39, %cst_47 {dimension_numbers = #tpu.dot_dimension_numbers<[2], [1], [1], [2], [0, 0, 0, 1, 1, 2], [0], [0]>} : vector<2x8x8xf32>, vector<2x8x8xf32>, vector<2x8x8xf32> -> vector<2x8x8xf32>
    "tpu.trace_stop"() : () -> ()
    %54 = vector.shape_cast %53 : vector<2x8x8xf32> to vector<16x8xf32>
    %55 = vector.extract_strided_slice %6 {offsets = [0, 0], sizes = [8, 32], strides = [1, 1]} : vector<32x32xf32> to vector<8x32xf32>
    %cst_48 = arith.constant dense<0.000000e+00> : vector<16x32xf32>
    %56 = tpu.matmul %54, %55, %cst_48 {dimension_numbers = #tpu.dot_dimension_numbers<[1], [0], [0], [1], [0, 0, 1, 1], [], []>} : vector<16x8xf32>, vector<8x32xf32>, vector<16x32xf32> -> vector<16x32xf32>
    %57 = arith.addf %37, %56 : vector<16x32xf32>
    %58 = vector.extract_strided_slice %36 {offsets = [0, 0, 8], sizes = [2, 8, 8], strides = [1, 1, 1]} : vector<2x8x32xf32> to vector<2x8x8xf32>
    %59 = vector.extract_strided_slice %36 {offsets = [0, 0, 8], sizes = [2, 8, 8], strides = [1, 1, 1]} : vector<2x8x32xf32> to vector<2x8x8xf32>
    "tpu.trace_start"() <{level = 10 : i32, message = "bqd,bkd->bqk"}> : () -> ()
    %cst_49 = arith.constant dense<0.000000e+00> : vector<2x8x8xf32>
    %60 = tpu.matmul %58, %59, %cst_49 {dimension_numbers = #tpu.dot_dimension_numbers<[2], [2], [1], [1], [0, 0, 0, 1, 1, 1], [0], [0]>} : vector<2x8x8xf32>, vector<2x8x8xf32>, vector<2x8x8xf32> -> vector<2x8x8xf32>
    "tpu.trace_stop"() : () -> ()
    %cst_50 = arith.constant 0.353553385 : f32
    %61 = vector.broadcast %cst_50 : f32 to vector<2x8x8xf32>
    %62 = arith.mulf %60, %61 : vector<2x8x8xf32>
    %63 = arith.addf %62, %33 : vector<2x8x8xf32>
    %cst_51 = arith.constant dense<0xFF800000> : vector<2x8xf32>
    %64 = vector.multi_reduction <maximumf>, %63, %cst_51 [2] : vector<2x8x8xf32> to vector<2x8xf32>
    %65 = vector.shape_cast %64 : vector<2x8xf32> to vector<2x8x1xf32>
    %66 = vector.broadcast %65 : vector<2x8x1xf32> to vector<2x8x8xf32>
    %67 = arith.subf %63, %66 : vector<2x8x8xf32>
    %68 = math.exp %67 : vector<2x8x8xf32>
    %cst_52 = arith.constant dense<0.000000e+00> : vector<2x8xf32>
    %69 = vector.multi_reduction <add>, %68, %cst_52 [2] : vector<2x8x8xf32> to vector<2x8xf32>
    %70 = vector.shape_cast %69 : vector<2x8xf32> to vector<2x8x1xf32>
    %71 = vector.broadcast %70 : vector<2x8x1xf32> to vector<2x8x8xf32>
    %72 = arith.divf %68, %71 : vector<2x8x8xf32>
    "tpu.trace_start"() <{level = 10 : i32, message = "bqk,bkd->bqd"}> : () -> ()
    %cst_53 = arith.constant dense<0.000000e+00> : vector<2x8x8xf32>
    %73 = tpu.matmul %72, %59, %cst_53 {dimension_numbers = #tpu.dot_dimension_numbers<[2], [1], [1], [2], [0, 0, 0, 1, 1, 2], [0], [0]>} : vector<2x8x8xf32>, vector<2x8x8xf32>, vector<2x8x8xf32> -> vector<2x8x8xf32>
    "tpu.trace_stop"() : () -> ()
    %74 = vector.shape_cast %73 : vector<2x8x8xf32> to vector<16x8xf32>
    %75 = vector.extract_strided_slice %6 {offsets = [8, 0], sizes = [8, 32], strides = [1, 1]} : vector<32x32xf32> to vector<8x32xf32>
    %cst_54 = arith.constant dense<0.000000e+00> : vector<16x32xf32>
    %76 = tpu.matmul %74, %75, %cst_54 {dimension_numbers = #tpu.dot_dimension_numbers<[1], [0], [0], [1], [0, 0, 1, 1], [], []>} : vector<16x8xf32>, vector<8x32xf32>, vector<16x32xf32> -> vector<16x32xf32>
    %77 = arith.addf %57, %76 : vector<16x32xf32>
    %78 = vector.extract_strided_slice %36 {offsets = [0, 0, 16], sizes = [2, 8, 8], strides = [1, 1, 1]} : vector<2x8x32xf32> to vector<2x8x8xf32>
    %79 = vector.extract_strided_slice %36 {offsets = [0, 0, 16], sizes = [2, 8, 8], strides = [1, 1, 1]} : vector<2x8x32xf32> to vector<2x8x8xf32>
    "tpu.trace_start"() <{level = 10 : i32, message = "bqd,bkd->bqk"}> : () -> ()
    %cst_55 = arith.constant dense<0.000000e+00> : vector<2x8x8xf32>
    %80 = tpu.matmul %78, %79, %cst_55 {dimension_numbers = #tpu.dot_dimension_numbers<[2], [2], [1], [1], [0, 0, 0, 1, 1, 1], [0], [0]>} : vector<2x8x8xf32>, vector<2x8x8xf32>, vector<2x8x8xf32> -> vector<2x8x8xf32>
    "tpu.trace_stop"() : () -> ()
    %cst_56 = arith.constant 0.353553385 : f32
    %81 = vector.broadcast %cst_56 : f32 to vector<2x8x8xf32>
    %82 = arith.mulf %80, %81 : vector<2x8x8xf32>
    %83 = arith.addf %82, %33 : vector<2x8x8xf32>
    %cst_57 = arith.constant dense<0xFF800000> : vector<2x8xf32>
    %84 = vector.multi_reduction <maximumf>, %83, %cst_57 [2] : vector<2x8x8xf32> to vector<2x8xf32>
    %85 = vector.shape_cast %84 : vector<2x8xf32> to vector<2x8x1xf32>
    %86 = vector.broadcast %85 : vector<2x8x1xf32> to vector<2x8x8xf32>
    %87 = arith.subf %83, %86 : vector<2x8x8xf32>
    %88 = math.exp %87 : vector<2x8x8xf32>
    %cst_58 = arith.constant dense<0.000000e+00> : vector<2x8xf32>
    %89 = vector.multi_reduction <add>, %88, %cst_58 [2] : vector<2x8x8xf32> to vector<2x8xf32>
    %90 = vector.shape_cast %89 : vector<2x8xf32> to vector<2x8x1xf32>
    %91 = vector.broadcast %90 : vector<2x8x1xf32> to vector<2x8x8xf32>
    %92 = arith.divf %88, %91 : vector<2x8x8xf32>
    "tpu.trace_start"() <{level = 10 : i32, message = "bqk,bkd->bqd"}> : () -> ()
    %cst_59 = arith.constant dense<0.000000e+00> : vector<2x8x8xf32>
    %93 = tpu.matmul %92, %79, %cst_59 {dimension_numbers = #tpu.dot_dimension_numbers<[2], [1], [1], [2], [0, 0, 0, 1, 1, 2], [0], [0]>} : vector<2x8x8xf32>, vector<2x8x8xf32>, vector<2x8x8xf32> -> vector<2x8x8xf32>
    "tpu.trace_stop"() : () -> ()
    %94 = vector.shape_cast %93 : vector<2x8x8xf32> to vector<16x8xf32>
    %95 = vector.extract_strided_slice %6 {offsets = [16, 0], sizes = [8, 32], strides = [1, 1]} : vector<32x32xf32> to vector<8x32xf32>
    %cst_60 = arith.constant dense<0.000000e+00> : vector<16x32xf32>
    %96 = tpu.matmul %94, %95, %cst_60 {dimension_numbers = #tpu.dot_dimension_numbers<[1], [0], [0], [1], [0, 0, 1, 1], [], []>} : vector<16x8xf32>, vector<8x32xf32>, vector<16x32xf32> -> vector<16x32xf32>
    %97 = arith.addf %77, %96 : vector<16x32xf32>
    %98 = vector.extract_strided_slice %36 {offsets = [0, 0, 24], sizes = [2, 8, 8], strides = [1, 1, 1]} : vector<2x8x32xf32> to vector<2x8x8xf32>
    %99 = vector.extract_strided_slice %36 {offsets = [0, 0, 24], sizes = [2, 8, 8], strides = [1, 1, 1]} : vector<2x8x32xf32> to vector<2x8x8xf32>
    "tpu.trace_start"() <{level = 10 : i32, message = "bqd,bkd->bqk"}> : () -> ()
    %cst_61 = arith.constant dense<0.000000e+00> : vector<2x8x8xf32>
    %100 = tpu.matmul %98, %99, %cst_61 {dimension_numbers = #tpu.dot_dimension_numbers<[2], [2], [1], [1], [0, 0, 0, 1, 1, 1], [0], [0]>} : vector<2x8x8xf32>, vector<2x8x8xf32>, vector<2x8x8xf32> -> vector<2x8x8xf32>
    "tpu.trace_stop"() : () -> ()
    %cst_62 = arith.constant 0.353553385 : f32
    %101 = vector.broadcast %cst_62 : f32 to vector<2x8x8xf32>
    %102 = arith.mulf %100, %101 : vector<2x8x8xf32>
    %103 = arith.addf %102, %33 : vector<2x8x8xf32>
    %cst_63 = arith.constant dense<0xFF800000> : vector<2x8xf32>
    %104 = vector.multi_reduction <maximumf>, %103, %cst_63 [2] : vector<2x8x8xf32> to vector<2x8xf32>
    %105 = vector.shape_cast %104 : vector<2x8xf32> to vector<2x8x1xf32>
    %106 = vector.broadcast %105 : vector<2x8x1xf32> to vector<2x8x8xf32>
    %107 = arith.subf %103, %106 : vector<2x8x8xf32>
    %108 = math.exp %107 : vector<2x8x8xf32>
    %cst_64 = arith.constant dense<0.000000e+00> : vector<2x8xf32>
    %109 = vector.multi_reduction <add>, %108, %cst_64 [2] : vector<2x8x8xf32> to vector<2x8xf32>
    %110 = vector.shape_cast %109 : vector<2x8xf32> to vector<2x8x1xf32>
    %111 = vector.broadcast %110 : vector<2x8x1xf32> to vector<2x8x8xf32>
    %112 = arith.divf %108, %111 : vector<2x8x8xf32>
    "tpu.trace_start"() <{level = 10 : i32, message = "bqk,bkd->bqd"}> : () -> ()
    %cst_65 = arith.constant dense<0.000000e+00> : vector<2x8x8xf32>
    %113 = tpu.matmul %112, %99, %cst_65 {dimension_numbers = #tpu.dot_dimension_numbers<[2], [1], [1], [2], [0, 0, 0, 1, 1, 2], [0], [0]>} : vector<2x8x8xf32>, vector<2x8x8xf32>, vector<2x8x8xf32> -> vector<2x8x8xf32>
    "tpu.trace_stop"() : () -> ()
    %114 = vector.shape_cast %113 : vector<2x8x8xf32> to vector<16x8xf32>
    %115 = vector.extract_strided_slice %6 {offsets = [24, 0], sizes = [8, 32], strides = [1, 1]} : vector<32x32xf32> to vector<8x32xf32>
    %cst_66 = arith.constant dense<0.000000e+00> : vector<16x32xf32>
    %116 = tpu.matmul %114, %115, %cst_66 {dimension_numbers = #tpu.dot_dimension_numbers<[1], [0], [0], [1], [0, 0, 1, 1], [], []>} : vector<16x8xf32>, vector<8x32xf32>, vector<16x32xf32> -> vector<16x32xf32>
    %117 = arith.addf %97, %116 : vector<16x32xf32>
    %118 = vector.shape_cast %117 : vector<16x32xf32> to vector<2x8x32xf32>
    %119 = arith.addf %31, %118 : vector<2x8x32xf32>
    %cst_67 = arith.constant dense<0.000000e+00> : vector<2x8xf32>
    %120 = vector.multi_reduction <add>, %119, %cst_67 [2] : vector<2x8x32xf32> to vector<2x8xf32>
    %121 = vector.shape_cast %120 : vector<2x8xf32> to vector<2x8x1xf32>
    %cst_68 = arith.constant 3.200000e+01 : f32
    %122 = vector.broadcast %cst_68 : f32 to vector<2x8x1xf32>
    %123 = arith.divf %121, %122 : vector<2x8x1xf32>
    %124 = vector.broadcast %123 : vector<2x8x1xf32> to vector<2x8x32xf32>
    %125 = arith.subf %119, %124 : vector<2x8x32xf32>
    %126 = arith.mulf %125, %125 : vector<2x8x32xf32>
    %cst_69 = arith.constant dense<0.000000e+00> : vector<2x8xf32>
    %127 = vector.multi_reduction <add>, %126, %cst_69 [2] : vector<2x8x32xf32> to vector<2x8xf32>
    %128 = vector.shape_cast %127 : vector<2x8xf32> to vector<2x8x1xf32>
    %cst_70 = arith.constant 3.200000e+01 : f32
    %129 = vector.broadcast %cst_70 : f32 to vector<2x8x1xf32>
    %130 = arith.divf %128, %129 : vector<2x8x1xf32>
    %131 = vector.broadcast %123 : vector<2x8x1xf32> to vector<2x8x32xf32>
    %132 = arith.subf %119, %131 : vector<2x8x32xf32>
    %cst_71 = arith.constant 9.99999974E-6 : f32
    %133 = vector.broadcast %cst_71 : f32 to vector<2x8x1xf32>
    %134 = arith.addf %130, %133 : vector<2x8x1xf32>
    %135 = math.rsqrt %134 : vector<2x8x1xf32>
    %136 = vector.broadcast %135 : vector<2x8x1xf32> to vector<2x8x32xf32>
    %137 = arith.mulf %132, %136 : vector<2x8x32xf32>
    %138 = vector.shape_cast %16 : vector<1x32xf32> to vector<1x1x32xf32>
    %139 = vector.broadcast %138 : vector<1x1x32xf32> to vector<2x8x32xf32>
    %140 = arith.mulf %137, %139 : vector<2x8x32xf32>
    %141 = vector.shape_cast %18 : vector<1x32xf32> to vector<1x1x32xf32>
    %142 = vector.broadcast %141 : vector<1x1x32xf32> to vector<2x8x32xf32>
    %143 = arith.addf %140, %142 : vector<2x8x32xf32>
    %c0_72 = arith.constant 0 : index
    %c0_73 = arith.constant 0 : index
    %c0_74 = arith.constant 0 : index
    %144 = vector.load %arg5[%c0_72, %c0_73, %c0_74] : memref<2x8x8xf32, #tpu.memory_space<vmem>>, vector<2x8x8xf32>
    %145 = vector.shape_cast %143 : vector<2x8x32xf32> to vector<16x32xf32>
    %cst_75 = arith.constant dense<0.000000e+00> : vector<16x32xf32>
    %146 = tpu.matmul %145, %8, %cst_75 {dimension_numbers = #tpu.dot_dimension_numbers<[1], [0], [0], [1], [0, 0, 1, 1], [], []>} : vector<16x32xf32>, vector<32x32xf32>, vector<16x32xf32> -> vector<16x32xf32>
    %147 = vector.shape_cast %146 : vector<16x32xf32> to vector<2x8x32xf32>
    %148 = vector.shape_cast %32 : vector<2x8x32xf32> to vector<16x32xf32>
    %cst_76 = arith.constant dense<0.000000e+00> : vector<16x32xf32>
    %149 = tpu.matmul %148, %8, %cst_76 {dimension_numbers = #tpu.dot_dimension_numbers<[1], [0], [0], [1], [0, 0, 1, 1], [], []>} : vector<16x32xf32>, vector<32x32xf32>, vector<16x32xf32> -> vector<16x32xf32>
    %150 = vector.shape_cast %149 : vector<16x32xf32> to vector<2x8x32xf32>
    %cst_77 = arith.constant 0.000000e+00 : f32
    %151 = vector.broadcast %cst_77 : f32 to vector<16x32xf32>
    %152 = vector.extract_strided_slice %147 {offsets = [0, 0, 0], sizes = [2, 8, 8], strides = [1, 1, 1]} : vector<2x8x32xf32> to vector<2x8x8xf32>
    %153 = vector.extract_strided_slice %150 {offsets = [0, 0, 0], sizes = [2, 8, 8], strides = [1, 1, 1]} : vector<2x8x32xf32> to vector<2x8x8xf32>
    "tpu.trace_start"() <{level = 10 : i32, message = "bqd,bkd->bqk"}> : () -> ()
    %cst_78 = arith.constant dense<0.000000e+00> : vector<2x8x8xf32>
    %154 = tpu.matmul %152, %153, %cst_78 {dimension_numbers = #tpu.dot_dimension_numbers<[2], [2], [1], [1], [0, 0, 0, 1, 1, 1], [0], [0]>} : vector<2x8x8xf32>, vector<2x8x8xf32>, vector<2x8x8xf32> -> vector<2x8x8xf32>
    "tpu.trace_stop"() : () -> ()
    %cst_79 = arith.constant 0.353553385 : f32
    %155 = vector.broadcast %cst_79 : f32 to vector<2x8x8xf32>
    %156 = arith.mulf %154, %155 : vector<2x8x8xf32>
    %157 = arith.addf %156, %144 : vector<2x8x8xf32>
    %cst_80 = arith.constant dense<0xFF800000> : vector<2x8xf32>
    %158 = vector.multi_reduction <maximumf>, %157, %cst_80 [2] : vector<2x8x8xf32> to vector<2x8xf32>
    %159 = vector.shape_cast %158 : vector<2x8xf32> to vector<2x8x1xf32>
    %160 = vector.broadcast %159 : vector<2x8x1xf32> to vector<2x8x8xf32>
    %161 = arith.subf %157, %160 : vector<2x8x8xf32>
    %162 = math.exp %161 : vector<2x8x8xf32>
    %cst_81 = arith.constant dense<0.000000e+00> : vector<2x8xf32>
    %163 = vector.multi_reduction <add>, %162, %cst_81 [2] : vector<2x8x8xf32> to vector<2x8xf32>
    %164 = vector.shape_cast %163 : vector<2x8xf32> to vector<2x8x1xf32>
    %165 = vector.broadcast %164 : vector<2x8x1xf32> to vector<2x8x8xf32>
    %166 = arith.divf %162, %165 : vector<2x8x8xf32>
    "tpu.trace_start"() <{level = 10 : i32, message = "bqk,bkd->bqd"}> : () -> ()
    %cst_82 = arith.constant dense<0.000000e+00> : vector<2x8x8xf32>
    %167 = tpu.matmul %166, %153, %cst_82 {dimension_numbers = #tpu.dot_dimension_numbers<[2], [1], [1], [2], [0, 0, 0, 1, 1, 2], [0], [0]>} : vector<2x8x8xf32>, vector<2x8x8xf32>, vector<2x8x8xf32> -> vector<2x8x8xf32>
    "tpu.trace_stop"() : () -> ()
    %168 = vector.shape_cast %167 : vector<2x8x8xf32> to vector<16x8xf32>
    %169 = vector.extract_strided_slice %10 {offsets = [0, 0], sizes = [8, 32], strides = [1, 1]} : vector<32x32xf32> to vector<8x32xf32>
    %cst_83 = arith.constant dense<0.000000e+00> : vector<16x32xf32>
    %170 = tpu.matmul %168, %169, %cst_83 {dimension_numbers = #tpu.dot_dimension_numbers<[1], [0], [0], [1], [0, 0, 1, 1], [], []>} : vector<16x8xf32>, vector<8x32xf32>, vector<16x32xf32> -> vector<16x32xf32>
    %171 = arith.addf %151, %170 : vector<16x32xf32>
    %172 = vector.extract_strided_slice %147 {offsets = [0, 0, 8], sizes = [2, 8, 8], strides = [1, 1, 1]} : vector<2x8x32xf32> to vector<2x8x8xf32>
    %173 = vector.extract_strided_slice %150 {offsets = [0, 0, 8], sizes = [2, 8, 8], strides = [1, 1, 1]} : vector<2x8x32xf32> to vector<2x8x8xf32>
    "tpu.trace_start"() <{level = 10 : i32, message = "bqd,bkd->bqk"}> : () -> ()
    %cst_84 = arith.constant dense<0.000000e+00> : vector<2x8x8xf32>
    %174 = tpu.matmul %172, %173, %cst_84 {dimension_numbers = #tpu.dot_dimension_numbers<[2], [2], [1], [1], [0, 0, 0, 1, 1, 1], [0], [0]>} : vector<2x8x8xf32>, vector<2x8x8xf32>, vector<2x8x8xf32> -> vector<2x8x8xf32>
    "tpu.trace_stop"() : () -> ()
    %cst_85 = arith.constant 0.353553385 : f32
    %175 = vector.broadcast %cst_85 : f32 to vector<2x8x8xf32>
    %176 = arith.mulf %174, %175 : vector<2x8x8xf32>
    %177 = arith.addf %176, %144 : vector<2x8x8xf32>
    %cst_86 = arith.constant dense<0xFF800000> : vector<2x8xf32>
    %178 = vector.multi_reduction <maximumf>, %177, %cst_86 [2] : vector<2x8x8xf32> to vector<2x8xf32>
    %179 = vector.shape_cast %178 : vector<2x8xf32> to vector<2x8x1xf32>
    %180 = vector.broadcast %179 : vector<2x8x1xf32> to vector<2x8x8xf32>
    %181 = arith.subf %177, %180 : vector<2x8x8xf32>
    %182 = math.exp %181 : vector<2x8x8xf32>
    %cst_87 = arith.constant dense<0.000000e+00> : vector<2x8xf32>
    %183 = vector.multi_reduction <add>, %182, %cst_87 [2] : vector<2x8x8xf32> to vector<2x8xf32>
    %184 = vector.shape_cast %183 : vector<2x8xf32> to vector<2x8x1xf32>
    %185 = vector.broadcast %184 : vector<2x8x1xf32> to vector<2x8x8xf32>
    %186 = arith.divf %182, %185 : vector<2x8x8xf32>
    "tpu.trace_start"() <{level = 10 : i32, message = "bqk,bkd->bqd"}> : () -> ()
    %cst_88 = arith.constant dense<0.000000e+00> : vector<2x8x8xf32>
    %187 = tpu.matmul %186, %173, %cst_88 {dimension_numbers = #tpu.dot_dimension_numbers<[2], [1], [1], [2], [0, 0, 0, 1, 1, 2], [0], [0]>} : vector<2x8x8xf32>, vector<2x8x8xf32>, vector<2x8x8xf32> -> vector<2x8x8xf32>
    "tpu.trace_stop"() : () -> ()
    %188 = vector.shape_cast %187 : vector<2x8x8xf32> to vector<16x8xf32>
    %189 = vector.extract_strided_slice %10 {offsets = [8, 0], sizes = [8, 32], strides = [1, 1]} : vector<32x32xf32> to vector<8x32xf32>
    %cst_89 = arith.constant dense<0.000000e+00> : vector<16x32xf32>
    %190 = tpu.matmul %188, %189, %cst_89 {dimension_numbers = #tpu.dot_dimension_numbers<[1], [0], [0], [1], [0, 0, 1, 1], [], []>} : vector<16x8xf32>, vector<8x32xf32>, vector<16x32xf32> -> vector<16x32xf32>
    %191 = arith.addf %171, %190 : vector<16x32xf32>
    %192 = vector.extract_strided_slice %147 {offsets = [0, 0, 16], sizes = [2, 8, 8], strides = [1, 1, 1]} : vector<2x8x32xf32> to vector<2x8x8xf32>
    %193 = vector.extract_strided_slice %150 {offsets = [0, 0, 16], sizes = [2, 8, 8], strides = [1, 1, 1]} : vector<2x8x32xf32> to vector<2x8x8xf32>
    "tpu.trace_start"() <{level = 10 : i32, message = "bqd,bkd->bqk"}> : () -> ()
    %cst_90 = arith.constant dense<0.000000e+00> : vector<2x8x8xf32>
    %194 = tpu.matmul %192, %193, %cst_90 {dimension_numbers = #tpu.dot_dimension_numbers<[2], [2], [1], [1], [0, 0, 0, 1, 1, 1], [0], [0]>} : vector<2x8x8xf32>, vector<2x8x8xf32>, vector<2x8x8xf32> -> vector<2x8x8xf32>
    "tpu.trace_stop"() : () -> ()
    %cst_91 = arith.constant 0.353553385 : f32
    %195 = vector.broadcast %cst_91 : f32 to vector<2x8x8xf32>
    %196 = arith.mulf %194, %195 : vector<2x8x8xf32>
    %197 = arith.addf %196, %144 : vector<2x8x8xf32>
    %cst_92 = arith.constant dense<0xFF800000> : vector<2x8xf32>
    %198 = vector.multi_reduction <maximumf>, %197, %cst_92 [2] : vector<2x8x8xf32> to vector<2x8xf32>
    %199 = vector.shape_cast %198 : vector<2x8xf32> to vector<2x8x1xf32>
    %200 = vector.broadcast %199 : vector<2x8x1xf32> to vector<2x8x8xf32>
    %201 = arith.subf %197, %200 : vector<2x8x8xf32>
    %202 = math.exp %201 : vector<2x8x8xf32>
    %cst_93 = arith.constant dense<0.000000e+00> : vector<2x8xf32>
    %203 = vector.multi_reduction <add>, %202, %cst_93 [2] : vector<2x8x8xf32> to vector<2x8xf32>
    %204 = vector.shape_cast %203 : vector<2x8xf32> to vector<2x8x1xf32>
    %205 = vector.broadcast %204 : vector<2x8x1xf32> to vector<2x8x8xf32>
    %206 = arith.divf %202, %205 : vector<2x8x8xf32>
    "tpu.trace_start"() <{level = 10 : i32, message = "bqk,bkd->bqd"}> : () -> ()
    %cst_94 = arith.constant dense<0.000000e+00> : vector<2x8x8xf32>
    %207 = tpu.matmul %206, %193, %cst_94 {dimension_numbers = #tpu.dot_dimension_numbers<[2], [1], [1], [2], [0, 0, 0, 1, 1, 2], [0], [0]>} : vector<2x8x8xf32>, vector<2x8x8xf32>, vector<2x8x8xf32> -> vector<2x8x8xf32>
    "tpu.trace_stop"() : () -> ()
    %208 = vector.shape_cast %207 : vector<2x8x8xf32> to vector<16x8xf32>
    %209 = vector.extract_strided_slice %10 {offsets = [16, 0], sizes = [8, 32], strides = [1, 1]} : vector<32x32xf32> to vector<8x32xf32>
    %cst_95 = arith.constant dense<0.000000e+00> : vector<16x32xf32>
    %210 = tpu.matmul %208, %209, %cst_95 {dimension_numbers = #tpu.dot_dimension_numbers<[1], [0], [0], [1], [0, 0, 1, 1], [], []>} : vector<16x8xf32>, vector<8x32xf32>, vector<16x32xf32> -> vector<16x32xf32>
    %211 = arith.addf %191, %210 : vector<16x32xf32>
    %212 = vector.extract_strided_slice %147 {offsets = [0, 0, 24], sizes = [2, 8, 8], strides = [1, 1, 1]} : vector<2x8x32xf32> to vector<2x8x8xf32>
    %213 = vector.extract_strided_slice %150 {offsets = [0, 0, 24], sizes = [2, 8, 8], strides = [1, 1, 1]} : vector<2x8x32xf32> to vector<2x8x8xf32>
    "tpu.trace_start"() <{level = 10 : i32, message = "bqd,bkd->bqk"}> : () -> ()
    %cst_96 = arith.constant dense<0.000000e+00> : vector<2x8x8xf32>
    %214 = tpu.matmul %212, %213, %cst_96 {dimension_numbers = #tpu.dot_dimension_numbers<[2], [2], [1], [1], [0, 0, 0, 1, 1, 1], [0], [0]>} : vector<2x8x8xf32>, vector<2x8x8xf32>, vector<2x8x8xf32> -> vector<2x8x8xf32>
    "tpu.trace_stop"() : () -> ()
    %cst_97 = arith.constant 0.353553385 : f32
    %215 = vector.broadcast %cst_97 : f32 to vector<2x8x8xf32>
    %216 = arith.mulf %214, %215 : vector<2x8x8xf32>
    %217 = arith.addf %216, %144 : vector<2x8x8xf32>
    %cst_98 = arith.constant dense<0xFF800000> : vector<2x8xf32>
    %218 = vector.multi_reduction <maximumf>, %217, %cst_98 [2] : vector<2x8x8xf32> to vector<2x8xf32>
    %219 = vector.shape_cast %218 : vector<2x8xf32> to vector<2x8x1xf32>
    %220 = vector.broadcast %219 : vector<2x8x1xf32> to vector<2x8x8xf32>
    %221 = arith.subf %217, %220 : vector<2x8x8xf32>
    %222 = math.exp %221 : vector<2x8x8xf32>
    %cst_99 = arith.constant dense<0.000000e+00> : vector<2x8xf32>
    %223 = vector.multi_reduction <add>, %222, %cst_99 [2] : vector<2x8x8xf32> to vector<2x8xf32>
    %224 = vector.shape_cast %223 : vector<2x8xf32> to vector<2x8x1xf32>
    %225 = vector.broadcast %224 : vector<2x8x1xf32> to vector<2x8x8xf32>
    %226 = arith.divf %222, %225 : vector<2x8x8xf32>
    "tpu.trace_start"() <{level = 10 : i32, message = "bqk,bkd->bqd"}> : () -> ()
    %cst_100 = arith.constant dense<0.000000e+00> : vector<2x8x8xf32>
    %227 = tpu.matmul %226, %213, %cst_100 {dimension_numbers = #tpu.dot_dimension_numbers<[2], [1], [1], [2], [0, 0, 0, 1, 1, 2], [0], [0]>} : vector<2x8x8xf32>, vector<2x8x8xf32>, vector<2x8x8xf32> -> vector<2x8x8xf32>
    "tpu.trace_stop"() : () -> ()
    %228 = vector.shape_cast %227 : vector<2x8x8xf32> to vector<16x8xf32>
    %229 = vector.extract_strided_slice %10 {offsets = [24, 0], sizes = [8, 32], strides = [1, 1]} : vector<32x32xf32> to vector<8x32xf32>
    %cst_101 = arith.constant dense<0.000000e+00> : vector<16x32xf32>
    %230 = tpu.matmul %228, %229, %cst_101 {dimension_numbers = #tpu.dot_dimension_numbers<[1], [0], [0], [1], [0, 0, 1, 1], [], []>} : vector<16x8xf32>, vector<8x32xf32>, vector<16x32xf32> -> vector<16x32xf32>
    %231 = arith.addf %211, %230 : vector<16x32xf32>
    %232 = vector.shape_cast %231 : vector<16x32xf32> to vector<2x8x32xf32>
    %233 = arith.addf %143, %232 : vector<2x8x32xf32>
    %cst_102 = arith.constant dense<0.000000e+00> : vector<2x8xf32>
    %234 = vector.multi_reduction <add>, %233, %cst_102 [2] : vector<2x8x32xf32> to vector<2x8xf32>
    %235 = vector.shape_cast %234 : vector<2x8xf32> to vector<2x8x1xf32>
    %cst_103 = arith.constant 3.200000e+01 : f32
    %236 = vector.broadcast %cst_103 : f32 to vector<2x8x1xf32>
    %237 = arith.divf %235, %236 : vector<2x8x1xf32>
    %238 = vector.broadcast %237 : vector<2x8x1xf32> to vector<2x8x32xf32>
    %239 = arith.subf %233, %238 : vector<2x8x32xf32>
    %240 = arith.mulf %239, %239 : vector<2x8x32xf32>
    %cst_104 = arith.constant dense<0.000000e+00> : vector<2x8xf32>
    %241 = vector.multi_reduction <add>, %240, %cst_104 [2] : vector<2x8x32xf32> to vector<2x8xf32>
    %242 = vector.shape_cast %241 : vector<2x8xf32> to vector<2x8x1xf32>
    %cst_105 = arith.constant 3.200000e+01 : f32
    %243 = vector.broadcast %cst_105 : f32 to vector<2x8x1xf32>
    %244 = arith.divf %242, %243 : vector<2x8x1xf32>
    %245 = vector.broadcast %237 : vector<2x8x1xf32> to vector<2x8x32xf32>
    %246 = arith.subf %233, %245 : vector<2x8x32xf32>
    %cst_106 = arith.constant 9.99999974E-6 : f32
    %247 = vector.broadcast %cst_106 : f32 to vector<2x8x1xf32>
    %248 = arith.addf %244, %247 : vector<2x8x1xf32>
    %249 = math.rsqrt %248 : vector<2x8x1xf32>
    %250 = vector.broadcast %249 : vector<2x8x1xf32> to vector<2x8x32xf32>
    %251 = arith.mulf %246, %250 : vector<2x8x32xf32>
    %252 = vector.shape_cast %20 : vector<1x32xf32> to vector<1x1x32xf32>
    %253 = vector.broadcast %252 : vector<1x1x32xf32> to vector<2x8x32xf32>
    %254 = arith.mulf %251, %253 : vector<2x8x32xf32>
    %255 = vector.shape_cast %22 : vector<1x32xf32> to vector<1x1x32xf32>
    %256 = vector.broadcast %255 : vector<1x1x32xf32> to vector<2x8x32xf32>
    %257 = arith.addf %254, %256 : vector<2x8x32xf32>
    %258 = vector.shape_cast %257 : vector<2x8x32xf32> to vector<16x32xf32>
    %cst_107 = arith.constant dense<0.000000e+00> : vector<16x64xf32>
    %259 = tpu.matmul %258, %12, %cst_107 {dimension_numbers = #tpu.dot_dimension_numbers<[1], [0], [0], [1], [0, 0, 1, 1], [], []>} : vector<16x32xf32>, vector<32x64xf32>, vector<16x64xf32> -> vector<16x64xf32>
    %260 = vector.broadcast %30 : vector<1x64xf32> to vector<16x64xf32>
    %261 = arith.addf %259, %260 : vector<16x64xf32>
    %cst_108 = arith.constant 0.000000e+00 : f32
    %262 = vector.broadcast %cst_108 : f32 to vector<16x64xf32>
    %263 = arith.maximumf %261, %262 : vector<16x64xf32>
    %cst_109 = arith.constant dense<0.000000e+00> : vector<16x32xf32>
    %264 = tpu.matmul %263, %14, %cst_109 {dimension_numbers = #tpu.dot_dimension_numbers<[1], [1], [0], [0], [0, 0, 1, 0], [], []>} : vector<16x64xf32>, vector<32x64xf32>, vector<16x32xf32> -> vector<16x32xf32>
    %265 = vector.broadcast %28 : vector<1x32xf32> to vector<16x32xf32>
    %266 = arith.addf %264, %265 : vector<16x32xf32>
    %267 = arith.addf %266, %258 : vector<16x32xf32>
    %268 = vector.shape_cast %267 : vector<16x32xf32> to vector<2x8x32xf32>
    %cst_110 = arith.constant dense<0.000000e+00> : vector<2x8xf32>
    %269 = vector.multi_reduction <add>, %268, %cst_110 [2] : vector<2x8x32xf32> to vector<2x8xf32>
    %270 = vector.shape_cast %269 : vector<2x8xf32> to vector<2x8x1xf32>
    %cst_111 = arith.constant 3.200000e+01 : f32
    %271 = vector.broadcast %cst_111 : f32 to vector<2x8x1xf32>
    %272 = arith.divf %270, %271 : vector<2x8x1xf32>
    %273 = vector.broadcast %272 : vector<2x8x1xf32> to vector<2x8x32xf32>
    %274 = arith.subf %268, %273 : vector<2x8x32xf32>
    %275 = arith.mulf %274, %274 : vector<2x8x32xf32>
    %cst_112 = arith.constant dense<0.000000e+00> : vector<2x8xf32>
    %276 = vector.multi_reduction <add>, %275, %cst_112 [2] : vector<2x8x32xf32> to vector<2x8xf32>
    %277 = vector.shape_cast %276 : vector<2x8xf32> to vector<2x8x1xf32>
    %cst_113 = arith.constant 3.200000e+01 : f32
    %278 = vector.broadcast %cst_113 : f32 to vector<2x8x1xf32>
    %279 = arith.divf %277, %278 : vector<2x8x1xf32>
    %280 = vector.broadcast %272 : vector<2x8x1xf32> to vector<2x8x32xf32>
    %281 = arith.subf %268, %280 : vector<2x8x32xf32>
    %cst_114 = arith.constant 9.99999974E-6 : f32
    %282 = vector.broadcast %cst_114 : f32 to vector<2x8x1xf32>
    %283 = arith.addf %279, %282 : vector<2x8x1xf32>
    %284 = math.rsqrt %283 : vector<2x8x1xf32>
    %285 = vector.broadcast %284 : vector<2x8x1xf32> to vector<2x8x32xf32>
    %286 = arith.mulf %281, %285 : vector<2x8x32xf32>
    %287 = vector.shape_cast %24 : vector<1x32xf32> to vector<1x1x32xf32>
    %288 = vector.broadcast %287 : vector<1x1x32xf32> to vector<2x8x32xf32>
    %289 = arith.mulf %286, %288 : vector<2x8x32xf32>
    %290 = vector.shape_cast %26 : vector<1x32xf32> to vector<1x1x32xf32>
    %291 = vector.broadcast %290 : vector<1x1x32xf32> to vector<2x8x32xf32>
    %292 = arith.addf %289, %291 : vector<2x8x32xf32>
    %c0_115 = arith.constant 0 : index
    %c0_116 = arith.constant 0 : index
    %c0_117 = arith.constant 0 : index
    %293 = vector.load %arg11[%c0_115, %c0_116, %c0_117] : memref<2x8x32xf32, #tpu.memory_space<vmem>>, vector<2x8x32xf32>
    tpu.vector_store %arg11[%c0_115, %c0_116, %c0_117], %292 {strides = array<i32>} : memref<2x8x32xf32, #tpu.memory_space<vmem>>, vector<2x8x32xf32>,
    %c1_i32 = arith.constant 1 : i32
    %294 = arith.cmpi eq, %arg1, %c1_i32 : i32
    %295 = arith.extui %294 : i1 to i32
    %c0_i32_118 = arith.constant 0 : i32
    %296 = arith.cmpi ne, %295, %c0_i32_118 : i32
    scf.if %296 {
      %c0_119 = arith.constant 0 : index
      %c0_120 = arith.constant 0 : index
      %c0_121 = arith.constant 0 : index
      %297 = vector.load %arg10[%c0_119, %c0_120, %c0_121] : memref<2x8x32xf32, #tpu.memory_space<vmem>>, vector<2x8x32xf32>
      tpu.vector_store %arg10[%c0_119, %c0_120, %c0_121], %292 {strides = array<i32>} : memref<2x8x32xf32, #tpu.memory_space<vmem>>, vector<2x8x32xf32>,
    } else {
    }
    return
  }
  func.func @transform_0(%arg0: i32, %arg1: i32) -> (i32, i32, i32) {
    %c0_i32 = arith.constant 0 : i32
    %c0_i32_0 = arith.constant 0 : i32
    %c0_i32_1 = arith.constant 0 : i32
    return %arg0, %c0_i32, %c0_i32_0 : i32, i32, i32
  }
  func.func @transform_1(%arg0: i32, %arg1: i32) -> (i32, i32, i32) {
    %c0_i32 = arith.constant 0 : i32
    %c0_i32_0 = arith.constant 0 : i32
    %c0_i32_1 = arith.constant 0 : i32
    return %arg0, %c0_i32, %c0_i32_0 : i32, i32, i32
  }
  func.func @transform_2(%arg0: i32, %arg1: i32) -> (i32, i32, i32) {
    %c0_i32 = arith.constant 0 : i32
    %c0_i32_0 = arith.constant 0 : i32
    %c0_i32_1 = arith.constant 0 : i32
    return %arg0, %c0_i32, %c0_i32_0 : i32, i32, i32
  }
  func.func @transform_3(%arg0: i32, %arg1: i32) -> (i32, i32, i32) {
    %c0_i32 = arith.constant 0 : i32
    %c0_i32_0 = arith.constant 0 : i32
    %c0_i32_1 = arith.constant 0 : i32
    return %arg0, %c0_i32, %c0_i32_0 : i32, i32, i32
  }
  func.func @transform_4(%arg0: i32, %arg1: i32) -> (i32, i32, i32) {
    %c0_i32 = arith.constant 0 : i32
    %c0_i32_0 = arith.constant 0 : i32
    %c0_i32_1 = arith.constant 0 : i32
    return %arg1, %c0_i32, %c0_i32_0 : i32, i32, i32
  }
  func.func @transform_5(%arg0: i32, %arg1: i32) -> (i32, i32, i32) {
    %c0_i32 = arith.constant 0 : i32
    %c0_i32_0 = arith.constant 0 : i32
    %c0_i32_1 = arith.constant 0 : i32
    return %arg1, %c0_i32, %c0_i32_0 : i32, i32, i32
  }
  func.func @transform_6(%arg0: i32, %arg1: i32) -> (i32, i32, i32) {
    %c0_i32 = arith.constant 0 : i32
    %c0_i32_0 = arith.constant 0 : i32
    %c0_i32_1 = arith.constant 0 : i32
    return %arg1, %c0_i32, %c0_i32_0 : i32, i32, i32
  }
  func.func @transform_7(%arg0: i32, %arg1: i32) -> (i32, i32, i32) {
    %c0_i32 = arith.constant 0 : i32
    %c0_i32_0 = arith.constant 0 : i32
    %c0_i32_1 = arith.constant 0 : i32
    return %arg1, %c0_i32, %c0_i32_0 : i32, i32, i32
  }
  func.func @transform_8(%arg0: i32, %arg1: i32) -> (i32, i32, i32) {
    %c0_i32 = arith.constant 0 : i32
    %c0_i32_0 = arith.constant 0 : i32
    %c0_i32_1 = arith.constant 0 : i32
    return %arg0, %c0_i32, %c0_i32_0 : i32, i32, i32
  }
}

</mosaic_0001>

<bundles_post_ra>
// kernel: tpu_custom_call.1
= control target key start
LH: loop header
LB: loop body
LE: loop exit
PB: predicated region body
PF: predicated region fallthrough
CT: control target
= control target key end

     0   :  { %s3348_s0 = inlined_call_operand.vmem [shape: f32[4,8,32], index: 0, kind: input, shape index: {}]   ;;  %s3349_s1 = inlined_call_operand.vmem [shape: f32[4,8,32], index: 1, kind: input, shape index: {}]   ;;  %s3350_s2 = inlined_call_operand.vmem [shape: f32[4,8,8], index: 2, kind: input, shape index: {}]   ;;  %s3351_s3 = inlined_call_operand.vmem [shape: f32[4,8,8], index: 3, kind: input, shape index: {}]   ;;  %s3352_s4 = inlined_call_operand.vmem [shape: f32[2,128,32], index: 4, kind: input, shape index: {}]   ;;  %s3353_s5 = inlined_call_operand.vmem [shape: f32[2,64,64], index: 5, kind: input, shape index: {}]   ;;  %s3354_s6 = inlined_call_operand.vmem [shape: f32[2,8,32], index: 6, kind: input, shape index: {}]   ;;  %s3355_s7 = inlined_call_operand.vmem [shape: f32[2,1,64], index: 7, kind: input, shape index: {}]   ;;  %s3356_s8 = inlined_call_operand.hbm [shape: f32[4,8,32], index: 8, kind: output, shape index: {}]  }
   0x1   :  { %3366 = sst [smem:[#allocation15_spill]] %s3348_s0 }
   0x2   :  { %3367 = sst [smem:[#allocation16_spill]] %s3349_s1 }
   0x3   :  { %3368 = sst [smem:[#allocation17_spill]] %s3350_s2 }
   0x4   :  { %3369 = sst [smem:[#allocation18_spill]] %s3351_s3 }
   0x5   :  { %13 = vsyncpa [#allocation4], 0 }
   0x6   :  { %15 = vsyncpa [#allocation4 + $0x1], 0  ;;  %s2875_s27 = smov 0   ;;  %s2877_s28 = smov 0  }
   0x7   :  { %s2879_s29 = smov 0   ;;  %s2881_s30 = smov 0  }
   0x8   :  { %s2883_s9 = smov 0   ;;  %s2885_s10 = smov 0  }
   0x9   :  { %s2887_s11 = smov 0   ;;  %s2889_s12 = smov 0  }
   0xa LB: > { %3370 = sst [smem:[#allocation6_spill]] %s2794_s27  ;;  %s2458_s13 = sadd.s32 4294967295, %s2822_s12   ;;  %s2822_s12 = sphi %s2889_s12, %s21_s12   ;;  %s2818_s11 = sphi %s2887_s11, %s3394_s11   ;;  %s2814_s10 = sphi %s2885_s10, %s3393_s10   ;;  %s2810_s9 = sphi %s2883_s9, %s3392_s9   ;;  %s2806_s30 = sphi %s2881_s30, %s3391_s30   ;;  %s2802_s29 = sphi %s2879_s29, %s3390_s29   ;;  %s2798_s28 = sphi %s2877_s28, %s3396_s28   ;;  %s2794_s27 = sphi %s2875_s27, %s3395_s27  }
   0xb   : > { %3371 = sst [smem:[#allocation7_spill]] %s2802_s29  ;;  %s2459_s14 = sadd.s32 4294967294, %s2822_s12  }
   0xc   : > { %3372 = sst [smem:[#allocation8_spill]] %s2814_s10  ;;  %s30_s15 = sadd.s32 1, %s2814_s10 }
   0xd   : > { %3373 = sst [smem:[#allocation9_spill]] %s2818_s11  ;;  %p31_p0 = scmp.ge.s32.totalorder %s30_s15, 2 }
   0xe   : > { %3374 = sst [smem:[#allocation10_spill]] %s2822_s12  ;;  %s33_s16 = sadd.s32 1, %s2818_s11 }
   0xf   : > { %p258_p1 = scmp.ne.s32.totalorder %s2802_s29, %s2798_s28  ;;  %p259_p2 = scmp.eq.s32.totalorder %s2458_s13, 3 }
  0x10   : > { %s3398_s15 = smov (%p31_p0, %s30_s15), 0  ;;  %s3400_s16 = smov (!%p31_p0, %s33_s16), %s2818_s11 }
  0x11   : > { %3375 = sst [smem:[#allocation11_spill]] %s3398_s15  ;;  %p2924_p3 = por %p259_p2, %p258_p1 }
  0x12   : > { %p264_p4 = scmp.ne.s32.totalorder %s2798_s28, %s2794_s27  ;;  %p35_p5 = scmp.ge.s32.totalorder %s3400_s16, 2 }
  0x13   : > { %p265_p6 = scmp.eq.s32.totalorder %s2459_s14, 3  ;;  %p2462_p7 = scmp.ge.s32.totalorder %s2822_s12, 1 }
  0x14   : > { %p348_p8 = scmp.lt.s32.totalorder %s2822_s12, 5  ;;  %s3402_s16 = smov (%p35_p5, %s3400_s16), 0 }
  0x15   : > { %3377 = sst [smem:[#allocation12_spill]] %s3402_s16  ;;  %p2934_p9 = por %p265_p6, %p264_p4 }
  0x16   : > { %p349_p10 = pnand %p2462_p7, %p348_p8  ;;  %s245_s19 = ssub.s32 %s2818_s11, %s3402_s16 }
  0x17   : > { %s3378_s18 = scalar_select %p2934_p9, 1, 0 }
  0x18   : > { %s248_s20 = sadd.s32 1, %s2802_s29  ;;  %p246_p11 = scmp.eq.s32.totalorder %s245_s19, 0 }
  0x19   : > { %3379 = sst [smem:[#allocation13_spill]] %s3378_s18  ;;  %352 = sbr.rel (%p349_p10) target bundleno = 4336 (0x10f0), region = 52 }
  0x1a   : > { %s2942_s21 = scalar_select %p246_p11, %s2802_s29, %s248_s20  }
  0x1b   : > { %s3358_s22 = sand.u32 (!%p349_p10), 1, %s2798_s28   ;;  %s2464_s23 = sshll.u32 (!%p349_p10), %s2810_s9, 1 }
  0x1c   : > { %3380 = sst [smem:[#allocation14_spill]] %s2942_s21  ;;  %s2463_s24 = sshll.u32 (!%p349_p10), %s3358_s22, 4 }
  0x1d   : > { %p415_p12 = scmp.lt.s32.totalorder (!%p349_p10), %s2464_s23, 3  ;;  %p438_p13 = scmp.lt.s32.totalorder (!%p349_p10), %s2806_s30, 1 }
  0x1e   : > { %s3381_s0 = sld [smem:[#allocation15_spill]]  ;;  %p2477_p0 = scmp.ne.s32.totalorder %s2806_s30, 0 }
  0x1f   : > { %s3404_s23 = smov (!%p415_p12, %s2464_s23), 3  ;;  %s3382_s1 = sld [smem:[#allocation16_spill]] }
  0x20   : > { %s2950_s25 = scalar_select %p438_p13, %s2806_s30, 1 }
  0x21   : > { %s2465_s26 = sshll.u32 %s3404_s23, 3  ;;  %s3383_s2 = sld [smem:[#allocation17_spill]] }
  0x22   : > { %s3384_s3 = sld [smem:[#allocation18_spill]]  ;;  %s2562_s23 = sshll.u32 %s2950_s25, 7 }
  0x23   : > { %s2563_s27 = sshll.u32 %s2950_s25, 6  ;;  %s2975_s14 = scalar_lea.vmem %s3352_s4, %s2562_s23 }
  0x24   : > { %s418_s19 = scalar_lea.vmem %s3381_s0, %s2465_s26  ;;  %s2980_s0 = scalar_lea.vmem %s3353_s5, %s2563_s27 }
  0x25   : > { %s2958_s15 = scalar_lea.vmem %s3382_s1, %s2465_s26  ;;  %s2476_s11 = sshll.u32 %s2950_s25, 3 }
  0x26   : > { %459 = sbr.rel (%p2477_p0) target bundleno = 46 (0x2e), region = 56 }
  0x27   : > { %s2963_s10 = scalar_lea.vmem %s3383_s2, %s2465_s26  ;;  %s454_s2 = scalar_lea.vmem %s3355_s7, %s2950_s25 }
  0x28   : > { %s2968_s18 = scalar_lea.vmem %s3384_s3, %s2465_s26  ;;  %s2990_s26 = scalar_lea.vmem %s3354_s6, %s2476_s11 }
  0x29   : > { %s2992_s3 = scalar_lea.vmem [#allocation3], %s2463_s24 }
  0x2b   : > { %v460_v0 = vld [vmem:[%s418_s19] sm:$0xff]  ;;  %vm462_vm0 = vcmask 261120   ;;  %v461_v1 = vld [vmem:[%s418_s19 + $0x8] sm:$0xff] }
  0x2c   : > { %463 = vst.msk [vmem:[#allocation2] sm:$0xff] %vm462_vm0, %v460_v0 }
  0x2d   : > { %464 = vst.msk [vmem:[#allocation2 + $0x8] sm:$0xff] %vm462_vm0, %v461_v1 }
  0x2e PF: > { %v468_v2 = vld [vmem:[%s2975_s14 + $0x18] sm:$0xff]  ;;  %v467_v3 = vld [vmem:[%s2975_s14 + $0x10] sm:$0xff]  ;;  %v466_v4 = vld [vmem:[%s2975_s14 + $0x8] sm:$0xff]  ;;  %vm503_vm1 = vcmask 261120   ;;  %vm533_vm2 = vcmask 64512   ;;  %s2824_s1 = smov 120  }
  0x2f   : > { %522 = vmatpush.msra.mxu0 %v468_v2  ;;  %v465_v5 = vld [vmem:[%s2975_s14] sm:$0xff]  ;;  %v3033_v18 = vld [vmem:[%s2963_s10 + $0x8] sm:$0xff]  ;;  %s2825_s27 = smov 112   ;;  %p2556_p1 = scmp.ne.s32.totalorder %s2806_s30, 1 }
  0x30   : > { %v3028_v13 = vld [vmem:[%s2963_s10] sm:$0xff]  ;;  %s2826_s10 = smov 104  }
  0x31   : > { %523 = vmatpush.msra.mxu0 %v467_v3  ;;  %v469_v36 = vld [vmem:[%s2975_s14 + $0x20] sm:$0xff] }
  0x33   : > { %524 = vmatpush.msra.mxu0 %v466_v4  ;;  %v2999_v6 = vld [vmem:[#allocation2] sm:$0xff] }
  0x34   : > { %v3003_v7 = vld [vmem:[#allocation2 + $0x8] sm:$0xff] }
  0x35   : > { %525 = vmatpush.msra.mxu0 %v465_v5 }
  0x36   : > { %2478 = vmatmul.msk.f32.vlgmr.msra.gmra.mxu0 %vm503_vm1, %v2999_v6 }
  0x3e   : > { %2479 = vmatmul.msk.f32.gmra.mxu0 %vm503_vm1, %v3003_v7 }
  0xb3   : > { %v527_v8 = vpop.f32.mrf.mxu0 }
  0xb4   : > { %678 = vrot.lane.b32.xlu0 %v527_v8, %s2824_s1  ;;  %2480 = vmatpush.xpose.msk.msrb.mxu0 %vm533_vm2, %v527_v8 }
  0xb5   : > { %650 = vmatpush.msra.mxu3 %v527_v8 }
  0xb7   : > { %2481 = vmatmul.msk.f32.vlgmr.msrb.gmra.mxu0 %vm533_vm2, %v527_v8 }
  0xb8   : > { %876 = vmatpush.msra.mxu0 %v469_v36 }
  0xbb   : > { %v3010_v9 = vpop.f32.mrf.mxu0 }
  0xbc   : > { %2482 = vmatpush.xpose.msk.msra.mxu2 %vm533_vm2, %v3010_v9  ;;  %702 = vrot.lane.b32.xlu0 %v3010_v9, %s2824_s1 }
  0xbd   : > { %673 = vmatpush.msrb.mxu3 %v3010_v9 }
  0xbf   : > { %2483 = vmatmul.msk.f32.vlgmr.msra.gmra.mxu2 %vm533_vm2, %v3010_v9 }
 0x126   : > { %v3019_v10 = vpop.permute.xlu0 %678 }
 0x127   : > { %2486 = vmatpush.xpose.msk.msra.mxu1 %vm533_vm2, %v3019_v10 }
 0x12a   : > { %2487 = vmatmul.msk.f32.vlgmr.msra.gmra.mxu1 %vm533_vm2, %v3019_v10 }
 0x12e   : > { %v703_v11 = vpop.permute.xlu0 %702 }
 0x12f   : > { %2488 = vmatpush.xpose.msk.msrb.mxu2 %vm533_vm2, %v703_v11  ;;  %821 = vmatpush.msrb.mxu1 %v703_v11 }
 0x132   : > { %2489 = vmatmul.msk.f32.vlgmr.msrb.gmra.mxu2 %vm533_vm2, %v703_v11 }
 0x134   : > { %v554_v12 = vpop.f32.mrf.mxu0 }
 0x135   : > { %v580_v14 = vmul.f32 0.35355338, %v554_v12 }
 0x137   : > { %v582_v15 = vadd.f32 %v580_v14, %v3028_v13 }
 0x139   : > { %v584_v16 = vsel %vm533_vm2, %v582_v15, -inf }
 0x13a   : > { %585 = vmax.xlane.f32.xlu1 %v584_v16 }
 0x142   : > { %v577_v17 = vpop.f32.mrf.mxu2 }
 0x143   : > { %v581_v19 = vmul.f32 0.35355338, %v577_v17 }
 0x145   : > { %v583_v20 = vadd.f32 %v581_v19, %v3033_v18 }
 0x147   : > { %v587_v21 = vsel %vm533_vm2, %v583_v20, -inf }
 0x148   : > { %588 = vmax.xlane.f32.xlu1 %v587_v21 }
 0x1a7   : > { %v699_v22 = vpop.f32.mrf.mxu1 }
 0x1a8   : > { %v726_v23 = vmul.f32 0.35355338, %v699_v22 }
 0x1aa   : > { %v728_v24 = vadd.f32 %v726_v23, %v3028_v13 }
 0x1ac   : > { %v730_v25 = vsel %vm533_vm2, %v728_v24, -inf }
 0x1ad   : > { %731 = vmax.xlane.f32.xlu2 %v730_v25  ;;  %v586_v26 = vpop.xlane.xlu1 %585 }
 0x1ae   : > { %v590_v27 = vsub.f32 %v582_v15, %v586_v26 }
 0x1b0   : > { %v592_v28 = vmul.f32 1.442695, %v590_v27 }
 0x1b2   : > { %2650 = vpow2.f32 %v592_v28 }
 0x1b5   : > { %v723_v40 = vpop.f32.mrf.mxu2 }
 0x1b6   : > { %v727_v42 = vmul.f32 0.35355338, %v723_v40 }
 0x1b8   : > { %v2651_v29 = vpop.eup %2650  ;;  %v729_v45 = vadd.f32 %v727_v42, %v3033_v18 }
 0x1b9   : > { %v596_v30 = vsel %vm533_vm2, %v2651_v29, 0.0 }
 0x1ba   : > { %597 = vadd.xlane.f32.xlu2 %v596_v30  ;;  %v733_v47 = vsel %vm533_vm2, %v729_v45, -inf }
 0x1bb   : > { %v589_v31 = vpop.xlane.xlu1 %588 }
 0x1bc   : > { %v591_v32 = vsub.f32 %v583_v20, %v589_v31 }
 0x1be   : > { %v594_v33 = vmul.f32 1.442695, %v591_v32  ;;  %v470_v32 = vld [vmem:[%s2975_s14 + $0x28] sm:$0xff] }
 0x1bf   : > { %847 = vmatpush.msra.mxu2 %v470_v32 }
 0x1c0   : > { %2652 = vpow2.f32 %v594_v33 }
 0x1c6   : > { %v2653_v34 = vpop.eup %2652 }
 0x1c7   : > { %v599_v35 = vsel %vm533_vm2, %v2653_v34, 0.0 }
 0x1c8   : > { %600 = vadd.xlane.f32.xlu0 %v599_v35 }
 0x1d2   : > { %884 = vrot.lane.b32.xlu2 %v527_v8, %s2825_s27 }
 0x1da   : > { %1063 = vrot.lane.b32.xlu2 %v527_v8, %s2826_s10 }
 0x220   : > { %v732_v37 = vpop.xlane.xlu2 %731 }
 0x221   : > { %v736_v38 = vsub.f32 %v728_v24, %v732_v37 }
 0x223   : > { %v738_v39 = vmul.f32 1.442695, %v736_v38 }
 0x225   : > { %2654 = vpow2.f32 %v738_v39 }
 0x22b   : > { %v3044_v41 = vpop.eup %2654 }
 0x22c   : > { %v742_v43 = vsel %vm533_vm2, %v3044_v41, 0.0 }
 0x22d   : > { %743 = vadd.xlane.f32.xlu1 %v742_v43  ;;  %v598_v44 = vpop.xlane.xlu2 %597 }
 0x22e   : > { %2656 = vrcp.f32 %v598_v44  ;;  %v613_v51 = vand.u32 2147483648, %v598_v44  ;;  %v611_v53 = vand.u32 2147483647, %v598_v44  ;;  %vm607_vm4 = vweird.f32 %v598_v44 }
 0x230   : > { %v614_v56 = vor.u32 1.1754944e-38, %v613_v51  ;;  %vm612_vm6 = vcmp.eq.f32.partialorder %v611_v53, 8.507059e+37 }
 0x234   : > { %v2657_v46 = vpop.eup %2656 }
 0x235   : > { %v603_v48 = vmul.f32 %v2657_v46, %v598_v44  ;;  %734 = vmax.xlane.f32.xlu1 %v733_v47  ;;  %v3050_v49 = vpop.permute.xlu2 %884  ;;  %vm608_vm3 = vweird.f32 %v2657_v46 }
 0x236   : > { %vm609_vm5 = vmor %vm607_vm4, %vm608_vm3 }
 0x237   : > { %v604_v50 = vsub.f32 1.0, %v603_v48 }
 0x239   : > { %v605_v52 = vmul.f32 %v2657_v46, %v604_v50 }
 0x23b   : > { %v601_v54 = vpop.xlane.xlu0 %600  ;;  %v606_v55 = vadd.f32 %v2657_v46, %v605_v52 }
 0x23c   : > { %2658 = vrcp.f32 %v601_v54  ;;  %v628_v0 = vand.u32 2147483648, %v601_v54  ;;  %v626_v2 = vand.u32 2147483647, %v601_v54  ;;  %vm622_vm8 = vweird.f32 %v601_v54 }
 0x23d   : > { %v3052_v57 = vpop.permute.xlu2 %1063  ;;  %v610_v58 = vsel %vm609_vm5, %v2657_v46, %v606_v55 }
 0x23e   : > { %2504 = vmatpush.xpose.msk.msrb.mxu0 %vm533_vm2, %v3052_v57  ;;  %v615_v59 = vsel %vm612_vm6, %v614_v56, %v610_v58  ;;  %v629_v4 = vor.u32 1.1754944e-38, %v628_v0  ;;  %vm627_vm10 = vcmp.eq.f32.partialorder %v626_v2, 8.507059e+37 }
 0x23f   : > { %v616_v60 = vmul.f32 %v2651_v29, %v615_v59 }
 0x241   : > { %2484 = vmatmul.msk.f32.vlgmr.msra.gmra.mxu3 %vm533_vm2, %v616_v60 }
 0x242   : > { %v2659_v61 = vpop.eup %2658  ;;  %797 = vmatpush.msra.mxu3 %v3019_v10 }
 0x243   : > { %v618_v62 = vmul.f32 %v2659_v61, %v601_v54  ;;  %vm623_vm7 = vweird.f32 %v2659_v61 }
 0x244   : > { %vm624_vm9 = vmor %vm622_vm8, %vm623_vm7 }
 0x245   : > { %v619_v63 = vsub.f32 1.0, %v618_v62 }
 0x247   : > { %v620_v1 = vmul.f32 %v2659_v61, %v619_v63 }
 0x249   : > { %v621_v3 = vadd.f32 %v2659_v61, %v620_v1 }
 0x24b   : > { %v625_v5 = vsel %vm624_vm9, %v2659_v61, %v621_v3 }
 0x24c   : > { %v630_v8 = vsel %vm627_vm10, %v629_v4, %v625_v5 }
 0x24d   : > { %v631_v11 = vmul.f32 %v2653_v34, %v630_v8 }
 0x24f   : > { %2485 = vmatmul.msk.f32.vlgmr.msrb.gmra.mxu3 %vm533_vm2, %v631_v11 }
 0x250   : > { %2496 = vmatpush.xpose.msk.msrb.mxu3 %vm533_vm2, %v3050_v49 }
 0x2a0   : > { %v744_v10 = vpop.xlane.xlu1 %743 }
 0x2a1   : > { %2660 = vrcp.f32 %v744_v10  ;;  %v759_v19 = vand.u32 2147483648, %v744_v10  ;;  %v757_v22 = vand.u32 2147483647, %v744_v10  ;;  %vm753_vm12 = vweird.f32 %v744_v10 }
 0x2a3   : > { %v760_v24 = vor.u32 1.1754944e-38, %v759_v19  ;;  %vm758_vm14 = vcmp.eq.f32.partialorder %v757_v22, 8.507059e+37 }
 0x2a7   : > { %v2661_v12 = vpop.eup %2660 }
 0x2a8   : > { %v749_v14 = vmul.f32 %v2661_v12, %v744_v10  ;;  %v735_v15 = vpop.xlane.xlu1 %734  ;;  %vm754_vm11 = vweird.f32 %v2661_v12 }
 0x2a9   : > { %v737_v16 = vsub.f32 %v729_v45, %v735_v15  ;;  %vm755_vm13 = vmor %vm753_vm12, %vm754_vm11 }
 0x2aa   : > { %v750_v17 = vsub.f32 1.0, %v749_v14 }
 0x2ab   : > { %v740_v20 = vmul.f32 1.442695, %v737_v16 }
 0x2ac   : > { %v751_v21 = vmul.f32 %v2661_v12, %v750_v17 }
 0x2ad   : > { %2662 = vpow2.f32 %v740_v20 }
 0x2ae   : > { %v752_v23 = vadd.f32 %v2661_v12, %v751_v21 }
 0x2b0   : > { %v756_v25 = vsel %vm755_vm13, %v2661_v12, %v752_v23 }
 0x2b1   : > { %v761_v26 = vsel %vm758_vm14, %v760_v24, %v756_v25 }
 0x2b2   : > { %v762_v27 = vmul.f32 %v3044_v41, %v761_v26 }
 0x2b3   : > { %v2663_v28 = vpop.eup %2662 }
 0x2b4   : > { %2490 = vmatmul.msk.f32.vlgmr.msra.gmra.mxu3 %vm533_vm2, %v762_v27  ;;  %v745_v29 = vsel %vm533_vm2, %v2663_v28, 0.0 }
 0x2b5   : > { %1003 = vmatpush.msra.mxu3 %v3050_v49  ;;  %746 = vadd.xlane.f32.xlu1 %v745_v29  ;;  %v471_v29 = vld [vmem:[%s2975_s14 + $0x30] sm:$0xff] }
 0x2b6   : > { %1053 = vmatpush.msrb.mxu2 %v471_v29  ;;  %v2827_v29 = vmov 32.0  }
 0x2bc   : > { %2497 = vmatmul.msk.f32.vlgmr.msrb.gmra.mxu3 %vm533_vm2, %v3050_v49 }
 0x2c4   : > { %v652_v30 = vpop.f32.mrf.mxu3 }
 0x2c5   : > { %2494 = vmatmul.msk.f32.vlgmr.msra.gmra.mxu0 %vm533_vm2, %v652_v30 }
 0x2ce   : > { %908 = vrot.lane.b32.xlu1 %v3010_v9, %s2825_s27 }
 0x2d2   : > { %v675_v31 = vpop.f32.mrf.mxu3 }
 0x2d3   : > { %2495 = vmatmul.msk.f32.gmra.mxu0 %vm533_vm2, %v675_v31 }
 0x2db   : > { %2505 = vmatmul.msk.f32.vlgmr.msrb.gmra.mxu0 %vm533_vm2, %v3052_v57 }
 0x328   : > { %v747_v33 = vpop.xlane.xlu1 %746 }
 0x329   : > { %2664 = vrcp.f32 %v747_v33  ;;  %v774_v37 = vand.u32 2147483648, %v747_v33  ;;  %v772_v39 = vand.u32 2147483647, %v747_v33  ;;  %vm768_vm0 = vweird.f32 %v747_v33 }
 0x32b   : > { %v775_v41 = vor.u32 1.1754944e-38, %v774_v37  ;;  %vm773_vm4 = vcmp.eq.f32.partialorder %v772_v39, 8.507059e+37 }
 0x32f   : > { %v2665_v34 = vpop.eup %2664 }
 0x330   : > { %v764_v35 = vmul.f32 %v2665_v34, %v747_v33  ;;  %vm769_vm15 = vweird.f32 %v2665_v34 }
 0x331   : > { %vm770_vm3 = vmor %vm768_vm0, %vm769_vm15 }
 0x332   : > { %v765_v36 = vsub.f32 1.0, %v764_v35 }
 0x334   : > { %v766_v38 = vmul.f32 %v2665_v34, %v765_v36 }
 0x336   : > { %v767_v40 = vadd.f32 %v2665_v34, %v766_v38 }
 0x337   : > { %v799_v42 = vpop.f32.mrf.mxu3 }
 0x338   : > { %2492 = vmatmul.msk.f32.vlgmr.msra.gmra.mxu2 %vm533_vm2, %v799_v42  ;;  %v771_v43 = vsel %vm770_vm3, %v2665_v34, %v767_v40 }
 0x339   : > { %v776_v44 = vsel %vm773_vm4, %v775_v41, %v771_v43 }
 0x33a   : > { %v777_v45 = vmul.f32 %v2663_v28, %v776_v44 }
 0x33c   : > { %2491 = vmatmul.msk.f32.vlgmr.msrb.gmra.mxu1 %vm533_vm2, %v777_v45 }
 0x33f   : > { %v905_v46 = vpop.f32.mrf.mxu3 }
 0x340   : > { %v932_v47 = vmul.f32 0.35355338, %v905_v46  ;;  %v909_v48 = vpop.permute.xlu1 %908 }
 0x341   : > { %2498 = vmatpush.xpose.msk.msra.mxu1 %vm533_vm2, %v909_v48 }
 0x342   : > { %v934_v49 = vadd.f32 %v932_v47, %v3028_v13 }
 0x344   : > { %2499 = vmatmul.msk.f32.vlgmr.msra.gmra.mxu1 %vm533_vm2, %v909_v48  ;;  %v936_v50 = vsel %vm533_vm2, %v934_v49, -inf }
 0x345   : > { %1027 = vmatpush.msrb.mxu1 %v909_v48  ;;  %937 = vmax.xlane.f32.xlu2 %v936_v50 }
 0x347   : > { %1182 = vmatpush.msra.mxu1 %v3052_v57  ;;  %v3087_v57 = vpop.f32.mrf.mxu0 }
 0x350   : > { %v3089_v62 = vpop.f32.mrf.mxu0 }
 0x358   : > { %v1084_v63 = vpop.f32.mrf.mxu0 }
 0x359   : > { %v1111_v0 = vmul.f32 0.35355338, %v1084_v63 }
 0x35b   : > { %v1113_v1 = vadd.f32 %v1111_v0, %v3028_v13 }
 0x35d   : > { %v1115_v2 = vsel %vm533_vm2, %v1113_v1, -inf }
 0x3b8   : > { %v938_v51 = vpop.xlane.xlu2 %937 }
 0x3b9   : > { %v942_v52 = vsub.f32 %v934_v49, %v938_v51  ;;  %v823_v53 = vpop.f32.mrf.mxu1 }
 0x3ba   : > { %2493 = vmatmul.msk.f32.gmra.mxu2 %vm533_vm2, %v823_v53 }
 0x3bb   : > { %v944_v54 = vmul.f32 1.442695, %v942_v52 }
 0x3bd   : > { %2666 = vpow2.f32 %v944_v54 }
 0x3c1   : > { %v929_v55 = vpop.f32.mrf.mxu1 }
 0x3c2   : > { %v933_v56 = vmul.f32 0.35355338, %v929_v55 }
 0x3c3   : > { %v2667_v58 = vpop.eup %2666 }
 0x3c4   : > { %v948_v59 = vsel %vm533_vm2, %v2667_v58, 0.0  ;;  %v935_v60 = vadd.f32 %v933_v56, %v3033_v18 }
 0x3c5   : > { %949 = vadd.xlane.f32.xlu0 %v948_v59  ;;  %v472_v59 = vld [vmem:[%s2975_s14 + $0x38] sm:$0xff] }
 0x3c6   : > { %v939_v61 = vsel %vm533_vm2, %v935_v60, -inf }
 0x3c7   : > { %940 = vmax.xlane.f32.xlu1 %v939_v61 }
 0x3d9   : > { %1087 = vrot.lane.b32.xlu0 %v3010_v9, %s2826_s10 }
 0x403   : > { %1116 = vmax.xlane.f32.xlu0 %v1115_v2 }
 0x438   : > { %v950_v3 = vpop.xlane.xlu0 %949 }
 0x439   : > { %2668 = vrcp.f32 %v950_v3  ;;  %v965_v12 = vand.u32 2147483648, %v950_v3  ;;  %v963_v15 = vand.u32 2147483647, %v950_v3  ;;  %vm959_vm6 = vweird.f32 %v950_v3 }
 0x43a   : > { %v941_v4 = vpop.xlane.xlu1 %940 }
 0x43b   : > { %v943_v5 = vsub.f32 %v935_v60, %v941_v4  ;;  %v966_v19 = vor.u32 1.1754944e-38, %v965_v12  ;;  %vm964_vm8 = vcmp.eq.f32.partialorder %v963_v15, 8.507059e+37 }
 0x43d   : > { %v946_v8 = vmul.f32 1.442695, %v943_v5 }
 0x43f   : > { %v2669_v11 = vpop.eup %2668  ;;  %2670 = vpow2.f32 %v946_v8 }
 0x440   : > { %v955_v10 = vmul.f32 %v2669_v11, %v950_v3  ;;  %vm960_vm5 = vweird.f32 %v2669_v11 }
 0x441   : > { %vm961_vm7 = vmor %vm959_vm6, %vm960_vm5 }
 0x442   : > { %v956_v9 = vsub.f32 1.0, %v955_v10 }
 0x444   : > { %v957_v14 = vmul.f32 %v2669_v11, %v956_v9 }
 0x445   : > { %v2671_v16 = vpop.eup %2670 }
 0x446   : > { %v958_v17 = vadd.f32 %v2669_v11, %v957_v14  ;;  %v951_v13 = vsel %vm533_vm2, %v2671_v16, 0.0 }
 0x447   : > { %952 = vadd.xlane.f32.xlu2 %v951_v13 }
 0x448   : > { %v962_v20 = vsel %vm961_vm7, %v2669_v11, %v958_v17 }
 0x449   : > { %v967_v21 = vsel %vm964_vm8, %v966_v19, %v962_v20  ;;  %v849_v19 = vpop.f32.mrf.mxu2 }
 0x44a   : > { %v968_v22 = vmul.f32 %v2667_v58, %v967_v21 }
 0x44b   : > { %v1088_v23 = vpop.permute.xlu0 %1087 }
 0x44c   : > { %2500 = vmatmul.msk.f32.vlgmr.msra.gmra.mxu3 %vm533_vm2, %v968_v22  ;;  %1206 = vmatpush.msra.mxu0 %v1088_v23  ;;  %v879_v22 = vadd.f32 %v3087_v57, %v849_v19 }
 0x44d   : > { %2506 = vmatpush.xpose.msk.msrb.mxu3 %vm533_vm2, %v1088_v23 }
 0x451   : > { %1232 = vmatpush.msra.mxu3 %v472_v59  ;;  %v852_v20 = vpop.f32.mrf.mxu2  ;;  %v2642_v59 = vld [vmem:[%s2990_s26] ss:$0 sm:$0xff] }
 0x454   : > { %2507 = vmatmul.msk.f32.vlgmr.msrb.gmra.mxu3 %vm533_vm2, %v1088_v23 }
 0x476   : > { %v1117_v24 = vpop.xlane.xlu0 %1116 }
 0x477   : > { %v1121_v25 = vsub.f32 %v1113_v1, %v1117_v24 }
 0x479   : > { %v1123_v26 = vmul.f32 1.442695, %v1121_v25 }
 0x47b   : > { %2672 = vpow2.f32 %v1123_v26 }
 0x481   : > { %v2673_v27 = vpop.eup %2672 }
 0x482   : > { %v1127_v28 = vsel %vm533_vm2, %v2673_v27, 0.0 }
 0x483   : > { %1128 = vadd.xlane.f32.xlu2 %v1127_v28 }
 0x4ba   : > { %v953_v30 = vpop.xlane.xlu2 %952 }
 0x4bb   : > { %2674 = vrcp.f32 %v953_v30  ;;  %v980_v34 = vand.u32 2147483648, %v953_v30  ;;  %v978_v36 = vand.u32 2147483647, %v953_v30  ;;  %vm974_vm10 = vweird.f32 %v953_v30 }
 0x4bd   : > { %v981_v38 = vor.u32 1.1754944e-38, %v980_v34  ;;  %vm979_vm12 = vcmp.eq.f32.partialorder %v978_v36, 8.507059e+37 }
 0x4c1   : > { %v2675_v31 = vpop.eup %2674 }
 0x4c2   : > { %v970_v32 = vmul.f32 %v2675_v31, %v953_v30  ;;  %vm975_vm9 = vweird.f32 %v2675_v31 }
 0x4c3   : > { %vm976_vm11 = vmor %vm974_vm10, %vm975_vm9 }
 0x4c4   : > { %v971_v33 = vsub.f32 1.0, %v970_v32 }
 0x4c6   : > { %v972_v35 = vmul.f32 %v2675_v31, %v971_v33 }
 0x4c8   : > { %v973_v37 = vadd.f32 %v2675_v31, %v972_v35 }
 0x4ca   : > { %v977_v39 = vsel %vm976_vm11, %v2675_v31, %v973_v37 }
 0x4cb   : > { %v982_v40 = vsel %vm979_vm12, %v981_v38, %v977_v39  ;;  %v476_v39 = vld [vmem:[%s2975_s14 + $0x58] sm:$0xff] }
 0x4cc   : > { %v983_v41 = vmul.f32 %v2671_v16, %v982_v40  ;;  %v475_v40 = vld [vmem:[%s2975_s14 + $0x50] sm:$0xff]  ;;  %1350 = vmatpush.msra.mxu2 %v476_v39 }
 0x4ce   : > { %2501 = vmatmul.msk.f32.vlgmr.msrb.gmra.mxu1 %vm533_vm2, %v983_v41  ;;  %v474_v41 = vld [vmem:[%s2975_s14 + $0x48] sm:$0xff]  ;;  %1351 = vmatpush.msra.mxu2 %v475_v40 }
 0x4cf   : > { %v1005_v42 = vpop.f32.mrf.mxu3  ;;  %1321 = vmatpush.msrb.mxu1 %v476_v39 }
 0x4d0   : > { %2502 = vmatmul.msk.f32.vlgmr.msrb.gmra.mxu2 %vm533_vm2, %v1005_v42  ;;  %v473_v42 = vld [vmem:[%s2975_s14 + $0x40] sm:$0xff] }
 0x4d1   : > { %1322 = vmatpush.msrb.mxu1 %v475_v40  ;;  %1352 = vmatpush.msra.mxu2 %v474_v41 }
 0x4d3   : > { %1323 = vmatpush.msrb.mxu1 %v474_v41  ;;  %1353 = vmatpush.msra.mxu2 %v473_v42 }
 0x4d5   : > { %1324 = vmatpush.msrb.mxu1 %v473_v42 }
 0x4d7   : > { %v1108_v43 = vpop.f32.mrf.mxu3 }
 0x4d8   : > { %v1112_v44 = vmul.f32 0.35355338, %v1108_v43  ;;  %v499_v43 = vld [vmem:[%s2958_s15] sm:$0xff] }
 0x4da   : > { %v1114_v45 = vadd.f32 %v1112_v44, %v3033_v18 }
 0x4dc   : > { %v1118_v46 = vsel %vm533_vm2, %v1114_v45, -inf }
 0x4dd   : > { %1119 = vmax.xlane.f32.xlu2 %v1118_v46 }
 0x4f6   : > { %v1129_v47 = vpop.xlane.xlu2 %1128 }
 0x4f7   : > { %2676 = vrcp.f32 %v1129_v47  ;;  %v1144_v51 = vand.u32 2147483648, %v1129_v47  ;;  %v1142_v53 = vand.u32 2147483647, %v1129_v47  ;;  %vm1138_vm14 = vweird.f32 %v1129_v47 }
 0x4f9   : > { %v1145_v55 = vor.u32 1.1754944e-38, %v1144_v51  ;;  %vm1143_vm0 = vcmp.eq.f32.partialorder %v1142_v53, 8.507059e+37  ;;  %v500_v51 = vld [vmem:[%s2958_s15 + $0x8] sm:$0xff] }
 0x4fd   : > { %v2677_v48 = vpop.eup %2676 }
 0x4fe   : > { %v1134_v49 = vmul.f32 %v2677_v48, %v1129_v47  ;;  %vm1139_vm13 = vweird.f32 %v2677_v48 }
 0x4ff   : > { %vm1140_vm15 = vmor %vm1138_vm14, %vm1139_vm13 }
 0x500   : > { %v1135_v50 = vsub.f32 1.0, %v1134_v49 }
 0x502   : > { %v1136_v52 = vmul.f32 %v2677_v48, %v1135_v50 }
 0x504   : > { %v1137_v54 = vadd.f32 %v2677_v48, %v1136_v52 }
 0x506   : > { %v1141_v56 = vsel %vm1140_vm15, %v2677_v48, %v1137_v54 }
 0x507   : > { %v1146_v18 = vsel %vm1143_vm0, %v1145_v55, %v1141_v56 }
 0x508   : > { %v1147_v58 = vmul.f32 %v2673_v27, %v1146_v18 }
 0x50a   : > { %2508 = vmatmul.msk.f32.vlgmr.msra.gmra.mxu1 %vm533_vm2, %v1147_v58 }
 0x54b   : > { %v1029_v60 = vpop.f32.mrf.mxu1 }
 0x54c   : > { %2503 = vmatmul.msk.f32.gmra.mxu2 %vm533_vm2, %v1029_v60 }
 0x550   : > { %v1120_v61 = vpop.xlane.xlu2 %1119 }
 0x551   : > { %v1122_v63 = vsub.f32 %v1114_v45, %v1120_v61  ;;  %v882_v45 = vadd.f32 %v3089_v62, %v852_v20 }
 0x553   : > { %v1125_v0 = vmul.f32 1.442695, %v1122_v63  ;;  %v1055_v21 = vpop.f32.mrf.mxu2  ;;  %v2643_v63 = vld [vmem:[%s2990_s26 + $0x1] ss:$0 sm:$0xff] }
 0x554   : > { %v1061_v23 = vadd.f32 %v1055_v21, %v879_v22  ;;  %2514 = vmatmul.msk.f32.vlgmr.msra.gmra.mxu2 %vm503_vm1, %v499_v43 }
 0x555   : > { %2678 = vpow2.f32 %v1125_v0 }
 0x55b   : > { %v2679_v1 = vpop.eup %2678 }
 0x55c   : > { %v1130_v2 = vsel %vm533_vm2, %v2679_v1, 0.0  ;;  %2515 = vmatmul.msk.f32.gmra.mxu2 %vm503_vm1, %v500_v51 }
 0x55d   : > { %1131 = vadd.xlane.f32.xlu1 %v1130_v2 }
 0x587   : > { %v1184_v3 = vpop.f32.mrf.mxu1 }
 0x588   : > { %2510 = vmatmul.msk.f32.vlgmr.msra.gmra.mxu3 %vm533_vm2, %v1184_v3 }
 0x5cf   : > { %v1058_v44 = vpop.f32.mrf.mxu2 }
 0x5d0   : > { %v1132_v4 = vpop.xlane.xlu1 %1131  ;;  %v1062_v46 = vadd.f32 %v1058_v44, %v882_v45  ;;  %v3184_v45 = vld [vmem:[%s2968_s18 + $0x8] sm:$0xff] }
 0x5d1   : > { %2680 = vrcp.f32 %v1132_v4  ;;  %v1159_v10 = vand.u32 2147483648, %v1132_v4  ;;  %v1157_v12 = vand.u32 2147483647, %v1132_v4  ;;  %vm1153_vm4 = vweird.f32 %v1132_v4 }
 0x5d2   : > { %2682 = vrcp.f32 %v2827_v29 }
 0x5d3   : > { %v1160_v15 = vor.u32 1.1754944e-38, %v1159_v10  ;;  %vm1158_vm6 = vcmp.eq.f32.partialorder %v1157_v12, 8.507059e+37 }
 0x5d7   : > { %v2681_v5 = vpop.eup %2680  ;;  %v3135_v2 = vpop.f32.mrf.mxu2 }
 0x5d8   : > { %v1149_v8 = vmul.f32 %v2681_v5, %v1132_v4  ;;  %vm1154_vm3 = vweird.f32 %v2681_v5  ;;  %v2683_v30 = vpop.eup %2682  ;;  %1513 = vrot.lane.b32.xlu0 %v3135_v2, %s2824_s1  ;;  %2516 = vmatpush.xpose.msk.msrb.mxu0 %vm533_vm2, %v3135_v2 }
 0x5d9   : > { %vm1155_vm5 = vmor %vm1153_vm4, %vm1154_vm3  ;;  %v1251_v31 = vmul.f32 32.0, %v2683_v30  ;;  %vm1255_vm7 = vweird.f32 %v2683_v30  ;;  %1483 = vmatpush.msrb.mxu3 %v3135_v2 }
 0x5da   : > { %v1150_v11 = vsub.f32 1.0, %v1149_v8 }
 0x5db   : > { %v1252_v32 = vsub.f32 1.0, %v1251_v31 }
 0x5dc   : > { %v1151_v9 = vmul.f32 %v2681_v5, %v1150_v11 }
 0x5dd   : > { %v1253_v57 = vmul.f32 %v2683_v30, %v1252_v32 }
 0x5de   : > { %v1152_v14 = vadd.f32 %v2681_v5, %v1151_v9 }
 0x5df   : > { %v1254_v33 = vadd.f32 %v2683_v30, %v1253_v57  ;;  %v3144_v10 = vpop.f32.mrf.mxu2 }
 0x5e0   : > { %v1156_v16 = vsel %vm1155_vm5, %v2681_v5, %v1152_v14  ;;  %1506 = vmatpush.msra.mxu1 %v3144_v10 }
 0x5e1   : > { %v1161_v17 = vsel %vm1158_vm6, %v1160_v15, %v1156_v16  ;;  %v3113_v34 = vsel %vm1255_vm7, %v2683_v30, %v1254_v33  ;;  %v3170_v30 = vld [vmem:[%s2968_s18] sm:$0xff] }
 0x5e2   : > { %v1162_v13 = vmul.f32 %v2679_v1, %v1161_v17 }
 0x5e4   : > { %2509 = vmatmul.msk.f32.vlgmr.msra.gmra.mxu0 %vm533_vm2, %v1162_v13 }
 0x5e5   : > { %2518 = vmatpush.xpose.msk.msra.mxu0 %vm533_vm2, %v3144_v10 }
 0x60b   : > { %v1234_v24 = vpop.f32.mrf.mxu3 }
 0x60c   : > { %v1240_v25 = vadd.f32 %v1234_v24, %v1061_v23 }
 0x60e   : > { %v1242_v26 = vadd.f32 %v1240_v25, %v2999_v6 }
 0x610   : > { %v1244_v27 = vsel %vm503_vm1, %v1242_v26, 0.0 }
 0x611   : > { %1245 = vadd.xlane.f32.xlu2 %v1244_v27 }
 0x64a   : > { %v1514_v12 = vpop.permute.xlu0 %1513 }
 0x64b   : > { %2522 = vmatpush.xpose.msk.msrb.mxu2 %vm533_vm2, %v1514_v12  ;;  %1638 = vmatpush.msra.mxu3 %v1514_v12 }
 0x661   : > { %v1208_v28 = vpop.f32.mrf.mxu0 }
 0x662   : > { %2511 = vmatmul.msk.f32.gmra.mxu3 %vm533_vm2, %v1208_v28 }
 0x684   : > { %v1246_v6 = vpop.xlane.xlu2 %1245 }
 0x685   : > { %v1257_v35 = vmul.f32 %v3113_v34, %v1246_v6 }
 0x687   : > { %v1259_v36 = vsub.f32 %v1242_v26, %v1257_v35 }
 0x689   : > { %v1261_v37 = vmul.f32 %v1259_v36, %v1259_v36 }
 0x68b   : > { %v1263_v38 = vsel %vm503_vm1, %v1261_v37, 0.0 }
 0x68c   : > { %1264 = vadd.xlane.f32.xlu1 %v1263_v38 }
 0x6e5   : > { %v1237_v47 = vpop.f32.mrf.mxu3 }
 0x6e6   : > { %v1241_v48 = vadd.f32 %v1237_v47, %v1062_v46 }
 0x6e8   : > { %v1243_v49 = vadd.f32 %v1241_v48, %v3003_v7 }
 0x6ea   : > { %v1247_v50 = vsel %vm503_vm1, %v1243_v49, 0.0 }
 0x6eb   : > { %1248 = vadd.xlane.f32.xlu2 %v1247_v50 }
 0x6ff   : > { %v1265_v52 = vpop.xlane.xlu1 %1264 }
 0x700   : > { %v1269_v53 = vmul.f32 %v1265_v52, %v3113_v34 }
 0x702   : > { %v1271_v54 = vadd.f32 1e-05, %v1269_v53 }
 0x704   : > { %2684 = vrsqrt.f32 %v1271_v54  ;;  %vm1279_vm9 = vweird.f32 %v1271_v54 }
 0x70a   : > { %v2685_v55 = vpop.eup %2684 }
 0x70b   : > { %v1274_v62 = vmul.f32 %v2685_v55, %v1271_v54  ;;  %vm1280_vm8 = vweird.f32 %v2685_v55 }
 0x70c   : > { %vm1281_vm10 = vmor %vm1279_vm9, %vm1280_vm8 }
 0x70d   : > { %v1275_v56 = vmul.f32 %v2685_v55, %v1274_v62 }
 0x70f   : > { %v1276_v18 = vmul.f32 0.5, %v1275_v56 }
 0x711   : > { %v1277_v58 = vsub.f32 1.5, %v1276_v18 }
 0x713   : > { %v1278_v7 = vmul.f32 %v2685_v55, %v1277_v58 }
 0x715   : > { %v1282_v60 = vsel %vm1281_vm10, %v2685_v55, %v1278_v7 }
 0x716   : > { %v1293_v61 = vmul.f32 %v1282_v60, %v1259_v36 }
 0x718   : > { %v1296_v0 = vmul.f32 %v2642_v59, %v1293_v61 }
 0x71a   : > { %v3131_v1 = vadd.f32 %v2643_v63, %v1296_v0 }
 0x71c   : > { %2512 = vmatmul.msk.f32.vlgmr.msrb.gmra.mxu1 %vm503_vm1, %v3131_v1 }
 0x75e   : > { %v1249_v3 = vpop.xlane.xlu2 %1248 }
 0x75f   : > { %v1258_v4 = vmul.f32 %v3113_v34, %v1249_v3 }
 0x761   : > { %v1260_v5 = vsub.f32 %v1243_v49, %v1258_v4 }
 0x763   : > { %v1262_v8 = vmul.f32 %v1260_v5, %v1260_v5 }
 0x765   : > { %v1266_v11 = vsel %vm503_vm1, %v1262_v8, 0.0 }
 0x766   : > { %1267 = vadd.xlane.f32.xlu1 %v1266_v11 }
 0x799   : > { %v3149_v9 = vpop.f32.mrf.mxu1 }
 0x79a   : > { %1511 = vrot.lane.b32.xlu2 %v3149_v9, %s2824_s1  ;;  %2517 = vmatmul.msk.f32.vlgmr.msrb.gmra.mxu0 %vm533_vm2, %v3149_v9 }
 0x7a2   : > { %1541 = vrot.lane.b32.xlu2 %v3144_v10, %s2824_s1 }
 0x7aa   : > { %1727 = vrot.lane.b32.xlu2 %v3135_v2, %s2825_s27 }
 0x7b2   : > { %1725 = vrot.lane.b32.xlu2 %v3149_v9, %s2825_s27 }
 0x7d9   : > { %v1268_v14 = vpop.xlane.xlu1 %1267 }
 0x7da   : > { %v1270_v15 = vmul.f32 %v1268_v14, %v3113_v34 }
 0x7dc   : > { %v1272_v16 = vadd.f32 1e-05, %v1270_v15 }
 0x7de   : > { %2686 = vrsqrt.f32 %v1272_v16  ;;  %vm1289_vm12 = vweird.f32 %v1272_v16 }
 0x7e4   : > { %v2687_v17 = vpop.eup %2686 }
 0x7e5   : > { %v1284_v13 = vmul.f32 %v2687_v17, %v1272_v16  ;;  %vm1290_vm11 = vweird.f32 %v2687_v17 }
 0x7e6   : > { %vm1291_vm13 = vmor %vm1289_vm12, %vm1290_vm11 }
 0x7e7   : > { %v1285_v19 = vmul.f32 %v2687_v17, %v1284_v13 }
 0x7e9   : > { %v1286_v20 = vmul.f32 0.5, %v1285_v19 }
 0x7eb   : > { %v1287_v21 = vsub.f32 1.5, %v1286_v20 }
 0x7ed   : > { %v1288_v22 = vmul.f32 %v2687_v17, %v1287_v21 }
 0x7ef   : > { %v1292_v23 = vsel %vm1291_vm13, %v2687_v17, %v1288_v22 }
 0x7f0   : > { %v1294_v24 = vmul.f32 %v1292_v23, %v1260_v5 }
 0x7f2   : > { %v1297_v25 = vmul.f32 %v2642_v59, %v1294_v24 }
 0x7f4   : > { %v1512_v26 = vpop.permute.xlu2 %1511  ;;  %v3163_v27 = vadd.f32 %v2643_v63, %v1297_v25 }
 0x7f5   : > { %2523 = vmatmul.msk.f32.vlgmr.msrb.gmra.mxu2 %vm533_vm2, %v1512_v26  ;;  %v477_v26 = vld [vmem:[%s2975_s14 + $0x60] sm:$0xff] }
 0x7f6   : > { %2513 = vmatmul.msk.f32.gmra.mxu1 %vm503_vm1, %v3163_v27 }
 0x7fc   : > { %v1542_v28 = vpop.permute.xlu2 %1541 }
 0x7fd   : > { %2524 = vmatpush.xpose.msk.msrb.mxu0 %vm533_vm2, %v1542_v28  ;;  %1662 = vmatpush.msrb.mxu1 %v1542_v28 }
 0x804   : > { %v1728_v0 = vpop.permute.xlu2 %1727 }
 0x80c   : > { %v1726_v4 = vpop.permute.xlu2 %1725 }
 0x817   : > { %v1384_v29 = vpop.f32.mrf.mxu0 }
 0x818   : > { %v1413_v31 = vmul.f32 0.35355338, %v1384_v29 }
 0x81a   : > { %v1415_v32 = vadd.f32 %v1413_v31, %v3170_v30 }
 0x81c   : > { %v1417_v57 = vsel %vm533_vm2, %v1415_v32, -inf }
 0x81d   : > { %1418 = vmax.xlane.f32.xlu1 %v1417_v57 }
 0x873   : > { %v3174_v33 = vpop.f32.mrf.mxu1 }
 0x874   : > { %2519 = vmatmul.msk.f32.vlgmr.msra.gmra.mxu0 %vm533_vm2, %v3174_v33 }
 0x875   : > { %1717 = vmatpush.msra.mxu0 %v477_v26 }
 0x878   : > { %v1536_v6 = vpop.f32.mrf.mxu2 }
 0x879   : > { %v1567_v35 = vmul.f32 0.35355338, %v1536_v6  ;;  %v478_v6 = vld [vmem:[%s2975_s14 + $0x68] sm:$0xff] }
 0x87a   : > { %1688 = vmatpush.msra.mxu2 %v478_v6 }
 0x87b   : > { %v1569_v36 = vadd.f32 %v1567_v35, %v3170_v30 }
 0x87d   : > { %v1571_v37 = vsel %vm533_vm2, %v1569_v36, -inf }
 0x87e   : > { %1572 = vmax.xlane.f32.xlu1 %v1571_v37 }
 0x890   : > { %v1419_v38 = vpop.xlane.xlu1 %1418 }
 0x891   : > { %v1423_v39 = vsub.f32 %v1415_v32, %v1419_v38 }
 0x893   : > { %v1425_v40 = vmul.f32 1.442695, %v1423_v39 }
 0x895   : > { %2688 = vpow2.f32 %v1425_v40 }
 0x89b   : > { %v2689_v41 = vpop.eup %2688 }
 0x89c   : > { %v1429_v42 = vsel %vm533_vm2, %v2689_v41, 0.0 }
 0x89d   : > { %1430 = vadd.xlane.f32.xlu1 %v1429_v42 }
 0x8b6   : > { %1539 = vrot.lane.b32.xlu1 %v3174_v33, %s2824_s1 }
 0x8f1   : > { %v1410_v43 = vpop.f32.mrf.mxu0  ;;  %v1573_v44 = vpop.xlane.xlu1 %1572 }
 0x8f2   : > { %v1414_v46 = vmul.f32 0.35355338, %v1410_v43  ;;  %v1577_v47 = vsub.f32 %v1569_v36, %v1573_v44 }
 0x8f4   : > { %v1579_v48 = vmul.f32 1.442695, %v1577_v47  ;;  %v1416_v49 = vadd.f32 %v1414_v46, %v3184_v45 }
 0x8f6   : > { %2690 = vpow2.f32 %v1579_v48  ;;  %v1420_v50 = vsel %vm533_vm2, %v1416_v49, -inf }
 0x8f7   : > { %1421 = vmax.xlane.f32.xlu2 %v1420_v50 }
 0x8fc   : > { %v2691_v51 = vpop.eup %2690 }
 0x8fd   : > { %v1583_v52 = vsel %vm533_vm2, %v2691_v51, 0.0 }
 0x8fe   : > { %1584 = vadd.xlane.f32.xlu0 %v1583_v52 }
 0x90f   : > { %1755 = vrot.lane.b32.xlu2 %v3144_v10, %s2825_s27 }
 0x910   : > { %v1431_v53 = vpop.xlane.xlu1 %1430 }
 0x911   : > { %2692 = vrcp.f32 %v1431_v53  ;;  %v1446_v56 = vand.u32 2147483648, %v1431_v53  ;;  %v1444_v58 = vand.u32 2147483647, %v1431_v53  ;;  %vm1440_vm15 = vweird.f32 %v1431_v53 }
 0x913   : > { %v1447_v59 = vor.u32 1.1754944e-38, %v1446_v56  ;;  %vm1445_vm3 = vcmp.eq.f32.partialorder %v1444_v58, 8.507059e+37 }
 0x917   : > { %v2693_v54 = vpop.eup %2692  ;;  %1912 = vrot.lane.b32.xlu2 %v3149_v9, %s2826_s10 }
 0x918   : > { %v1436_v55 = vmul.f32 %v2693_v54, %v1431_v53  ;;  %vm1441_vm14 = vweird.f32 %v2693_v54 }
 0x919   : > { %vm1442_vm0 = vmor %vm1440_vm15, %vm1441_vm14 }
 0x91a   : > { %v1437_v62 = vsub.f32 1.0, %v1436_v55 }
 0x91c   : > { %v1438_v18 = vmul.f32 %v2693_v54, %v1437_v62 }
 0x91e   : > { %v1439_v7 = vadd.f32 %v2693_v54, %v1438_v18 }
 0x920   : > { %v1443_v60 = vsel %vm1442_vm0, %v2693_v54, %v1439_v7 }
 0x921   : > { %v1448_v61 = vsel %vm1445_vm3, %v1447_v59, %v1443_v60 }
 0x922   : > { %v1449_v63 = vmul.f32 %v2689_v41, %v1448_v61 }
 0x924   : > { %2520 = vmatmul.msk.f32.vlgmr.msrb.gmra.mxu3 %vm533_vm2, %v1449_v63 }
 0x925   : > { %2532 = vmatpush.xpose.msk.msrb.mxu3 %vm533_vm2, %v1728_v0 }
 0x928   : > { %v1540_v3 = vpop.permute.xlu1 %1539 }
 0x929   : > { %2525 = vmatmul.msk.f32.vlgmr.msrb.gmra.mxu0 %vm533_vm2, %v1540_v3 }
 0x96a   : > { %v1422_v5 = vpop.xlane.xlu2 %1421 }
 0x96b   : > { %v1424_v8 = vsub.f32 %v1416_v49, %v1422_v5 }
 0x96d   : > { %v1427_v11 = vmul.f32 1.442695, %v1424_v8 }
 0x96f   : > { %2694 = vpow2.f32 %v1427_v11 }
 0x971   : > { %v1585_v9 = vpop.xlane.xlu0 %1584 }
 0x972   : > { %2696 = vrcp.f32 %v1585_v9  ;;  %v1600_v13 = vand.u32 2147483648, %v1585_v9  ;;  %v1598_v20 = vand.u32 2147483647, %v1585_v9  ;;  %vm1594_vm5 = vweird.f32 %v1585_v9  ;;  %v1756_v47 = vpop.permute.xlu2 %1755 }
 0x974   : > { %v1601_v22 = vor.u32 1.1754944e-38, %v1600_v13  ;;  %vm1599_vm7 = vcmp.eq.f32.partialorder %v1598_v20, 8.507059e+37 }
 0x975   : > { %v2695_v12 = vpop.eup %2694 }
 0x976   : > { %v1432_v14 = vsel %vm533_vm2, %v2695_v12, 0.0 }
 0x977   : > { %1433 = vadd.xlane.f32.xlu1 %v1432_v14 }
 0x978   : > { %v2697_v15 = vpop.eup %2696 }
 0x979   : > { %v1590_v16 = vmul.f32 %v2697_v15, %v1585_v9  ;;  %vm1595_vm4 = vweird.f32 %v2697_v15 }
 0x97a   : > { %vm1596_vm6 = vmor %vm1594_vm5, %vm1595_vm4  ;;  %v1913_v7 = vpop.permute.xlu2 %1912 }
 0x97b   : > { %v1591_v17 = vsub.f32 1.0, %v1590_v16 }
 0x97d   : > { %v1592_v19 = vmul.f32 %v2697_v15, %v1591_v17 }
 0x97f   : > { %v1593_v21 = vadd.f32 %v2697_v15, %v1592_v19 }
 0x981   : > { %v1597_v23 = vsel %vm1596_vm6, %v2697_v15, %v1593_v21 }
 0x982   : > { %v1602_v24 = vsel %vm1599_vm7, %v1601_v22, %v1597_v23 }
 0x983   : > { %v1603_v25 = vmul.f32 %v2691_v51, %v1602_v24 }
 0x985   : > { %2526 = vmatmul.msk.f32.vlgmr.msra.gmra.mxu3 %vm533_vm2, %v1603_v25 }
 0x986   : > { %1852 = vmatpush.msra.mxu3 %v1728_v0 }
 0x98d   : > { %2533 = vmatmul.msk.f32.vlgmr.msrb.gmra.mxu3 %vm533_vm2, %v1726_v4 }
 0x990   : > { %1914 = vrot.lane.b32.xlu1 %v3135_v2, %s2826_s10 }
 0x998   : > { %1940 = vrot.lane.b32.xlu1 %v3174_v33, %s2826_s10 }
 0x9a6   : > { %v1564_v28 = vpop.f32.mrf.mxu0 }
 0x9a7   : > { %v1568_v29 = vmul.f32 0.35355338, %v1564_v28  ;;  %v1485_v31 = vpop.f32.mrf.mxu3 }
 0x9a8   : > { %2530 = vmatmul.msk.f32.vlgmr.msra.gmra.mxu0 %vm533_vm2, %v1485_v31 }
 0x9a9   : > { %v1570_v32 = vadd.f32 %v1568_v29, %v3184_v45 }
 0x9ab   : > { %v1574_v57 = vsel %vm533_vm2, %v1570_v32, -inf }
 0x9ac   : > { %1575 = vmax.xlane.f32.xlu0 %v1574_v57 }
 0x9ea   : > { %v1434_v35 = vpop.xlane.xlu1 %1433 }
 0x9eb   : > { %2698 = vrcp.f32 %v1434_v35  ;;  %v1461_v38 = vand.u32 2147483648, %v1434_v35  ;;  %v1459_v40 = vand.u32 2147483647, %v1434_v35  ;;  %vm1455_vm9 = vweird.f32 %v1434_v35 }
 0x9ed   : > { %v1462_v42 = vor.u32 1.1754944e-38, %v1461_v38  ;;  %vm1460_vm11 = vcmp.eq.f32.partialorder %v1459_v40, 8.507059e+37 }
 0x9f1   : > { %v2699_v36 = vpop.eup %2698 }
 0x9f2   : > { %v1451_v37 = vmul.f32 %v2699_v36, %v1434_v35  ;;  %vm1456_vm8 = vweird.f32 %v2699_v36 }
 0x9f3   : > { %vm1457_vm10 = vmor %vm1455_vm9, %vm1456_vm8 }
 0x9f4   : > { %v1452_v2 = vsub.f32 1.0, %v1451_v37 }
 0x9f6   : > { %v1453_v39 = vmul.f32 %v2699_v36, %v1452_v2 }
 0x9f8   : > { %v1454_v41 = vadd.f32 %v2699_v36, %v1453_v39 }
 0x9fa   : > { %v1458_v43 = vsel %vm1457_vm10, %v2699_v36, %v1454_v41 }
 0x9fb   : > { %v1463_v44 = vsel %vm1460_vm11, %v1462_v42, %v1458_v43 }
 0x9fc   : > { %v1464_v46 = vmul.f32 %v2695_v12, %v1463_v44 }
 0x9fe   : > { %2521 = vmatmul.msk.f32.vlgmr.msra.gmra.mxu1 %vm533_vm2, %v1464_v46 }
 0x9ff   : > { %2534 = vmatpush.xpose.msk.msra.mxu1 %vm533_vm2, %v1756_v47 }
 0xa02   : > { %v1915_v48 = vpop.permute.xlu1 %1914 }
 0xa03   : > { %2540 = vmatpush.xpose.msk.msrb.mxu0 %vm533_vm2, %v1915_v48 }
 0xa08   : > { %v1640_v49 = vpop.f32.mrf.mxu3 }
 0xa09   : > { %2528 = vmatmul.msk.f32.vlgmr.msra.gmra.mxu2 %vm533_vm2, %v1640_v49 }
 0xa0a   : > { %v1941_v2 = vpop.permute.xlu1 %1940 }
 0xa10   : > { %v1750_v50 = vpop.f32.mrf.mxu3 }
 0xa11   : > { %v1781_v51 = vmul.f32 0.35355338, %v1750_v50 }
 0xa13   : > { %v1783_v52 = vadd.f32 %v1781_v51, %v3170_v30 }
 0xa15   : > { %v1785_v53 = vsel %vm533_vm2, %v1783_v52, -inf }
 0xa16   : > { %1786 = vmax.xlane.f32.xlu0 %v1785_v53 }
 0xa1f   : > { %v1576_v54 = vpop.xlane.xlu0 %1575 }
 0xa20   : > { %v1578_v55 = vsub.f32 %v1570_v32, %v1576_v54 }
 0xa22   : > { %v1581_v62 = vmul.f32 1.442695, %v1578_v55 }
 0xa24   : > { %2700 = vpow2.f32 %v1581_v62 }
 0xa2a   : > { %1753 = vrot.lane.b32.xlu0 %v3174_v33, %s2825_s27  ;;  %v2701_v56 = vpop.eup %2700 }
 0xa2b   : > { %v1586_v18 = vsel %vm533_vm2, %v2701_v56, 0.0 }
 0xa54   : > { %1587 = vadd.xlane.f32.xlu0 %v1586_v18 }
 0xa7b   : > { %v1508_v58 = vpop.f32.mrf.mxu1 }
 0xa7c   : > { %2531 = vmatmul.msk.f32.gmra.mxu0 %vm533_vm2, %v1508_v58 }
 0xa84   : > { %2541 = vmatmul.msk.f32.vlgmr.msrb.gmra.mxu0 %vm533_vm2, %v1913_v7 }
 0xa89   : > { %v1787_v59 = vpop.xlane.xlu0 %1786 }
 0xa8a   : > { %v1791_v60 = vsub.f32 %v1783_v52, %v1787_v59 }
 0xa8c   : > { %v1793_v61 = vmul.f32 1.442695, %v1791_v60 }
 0xa8e   : > { %2702 = vpow2.f32 %v1793_v61 }
 0xa94   : > { %v2703_v63 = vpop.eup %2702 }
 0xa95   : > { %v1797_v33 = vsel %vm533_vm2, %v2703_v63, 0.0 }
 0xa96   : > { %1798 = vadd.xlane.f32.xlu0 %v1797_v33 }
 0xa9c   : > { %v1754_v0 = vpop.permute.xlu0 %1753 }
 0xaaa   : > { %1942 = vrot.lane.b32.xlu0 %v3144_v10, %s2826_s10  ;;  %v3224_v10 = vpop.f32.mrf.mxu0 }
 0xac7   : > { %v1588_v3 = vpop.xlane.xlu0 %1587 }
 0xac8   : > { %2704 = vrcp.f32 %v1588_v3  ;;  %v1615_v11 = vand.u32 2147483648, %v1588_v3  ;;  %v1613_v12 = vand.u32 2147483647, %v1588_v3  ;;  %vm1609_vm13 = vweird.f32 %v1588_v3 }
 0xaca   : > { %v1616_v15 = vor.u32 1.1754944e-38, %v1615_v11  ;;  %vm1614_vm15 = vcmp.eq.f32.partialorder %v1613_v12, 8.507059e+37 }
 0xace   : > { %v2705_v4 = vpop.eup %2704 }
 0xacf   : > { %v1605_v5 = vmul.f32 %v2705_v4, %v1588_v3  ;;  %vm1610_vm12 = vweird.f32 %v2705_v4 }
 0xad0   : > { %vm1611_vm14 = vmor %vm1609_vm13, %vm1610_vm12 }
 0xad1   : > { %v1606_v8 = vsub.f32 1.0, %v1605_v5 }
 0xad3   : > { %v1607_v9 = vmul.f32 %v2705_v4, %v1606_v8 }
 0xad5   : > { %v1608_v14 = vadd.f32 %v2705_v4, %v1607_v9 }
 0xad7   : > { %v1612_v16 = vsel %vm1611_vm14, %v2705_v4, %v1608_v14 }
 0xad8   : > { %v1617_v17 = vsel %vm1614_vm15, %v1616_v15, %v1612_v16 }
 0xad9   : > { %v1618_v13 = vmul.f32 %v2701_v56, %v1617_v17 }
 0xadb   : > { %2527 = vmatmul.msk.f32.vlgmr.msrb.gmra.mxu1 %vm533_vm2, %v1618_v13 }
 0xadc   : > { %1876 = vmatpush.msrb.mxu1 %v1756_v47  ;;  %v479_v47 = vld [vmem:[%s2975_s14 + $0x70] sm:$0xff] }
 0xadd   : > { %1902 = vmatpush.msrb.mxu2 %v479_v47 }
 0xae3   : > { %2535 = vmatmul.msk.f32.vlgmr.msra.gmra.mxu1 %vm533_vm2, %v1754_v0 }
 0xae4   : > { %2039 = vmatpush.msra.mxu1 %v1915_v48 }
 0xaf9   : > { %v3226_v19 = vpop.f32.mrf.mxu0 }
 0xb01   : > { %v1937_v20 = vpop.f32.mrf.mxu0 }
 0xb02   : > { %v1968_v21 = vmul.f32 0.35355338, %v1937_v20 }
 0xb04   : > { %v1970_v22 = vadd.f32 %v1968_v21, %v3170_v30 }
 0xb06   : > { %v1972_v23 = vsel %vm533_vm2, %v1970_v22, -inf }
 0xb07   : > { %1973 = vmax.xlane.f32.xlu2 %v1972_v23 }
 0xb09   : > { %v1799_v24 = vpop.xlane.xlu0 %1798 }
 0xb0a   : > { %2706 = vrcp.f32 %v1799_v24  ;;  %v1814_v29 = vand.u32 2147483648, %v1799_v24  ;;  %v1812_v32 = vand.u32 2147483647, %v1799_v24  ;;  %vm1808_vm3 = vweird.f32 %v1799_v24 }
 0xb0c   : > { %v1815_v6 = vor.u32 1.1754944e-38, %v1814_v29  ;;  %vm1813_vm5 = vcmp.eq.f32.partialorder %v1812_v32, 8.507059e+37 }
 0xb10   : > { %v2707_v25 = vpop.eup %2706 }
 0xb11   : > { %v1804_v26 = vmul.f32 %v2707_v25, %v1799_v24  ;;  %vm1809_vm0 = vweird.f32 %v2707_v25 }
 0xb12   : > { %vm1810_vm4 = vmor %vm1808_vm3, %vm1809_vm0 }
 0xb13   : > { %v1805_v28 = vsub.f32 1.0, %v1804_v26 }
 0xb15   : > { %v1806_v31 = vmul.f32 %v2707_v25, %v1805_v28 }
 0xb17   : > { %v1807_v57 = vadd.f32 %v2707_v25, %v1806_v31 }
 0xb19   : > { %v1811_v35 = vsel %vm1810_vm4, %v2707_v25, %v1807_v57 }
 0xb1a   : > { %v1816_v36 = vsel %vm1813_vm5, %v1815_v6, %v1811_v35 }
 0xb1b   : > { %v1817_v30 = vmul.f32 %v2703_v63, %v1816_v36 }
 0xb1c   : > { %v1943_v37 = vpop.permute.xlu0 %1942 }
 0xb1d   : > { %2536 = vmatmul.msk.f32.vlgmr.msra.gmra.mxu3 %vm533_vm2, %v1817_v30  ;;  %2063 = vmatpush.msra.mxu0 %v1943_v37 }
 0xb1e   : > { %2542 = vmatpush.xpose.msk.msrb.mxu3 %vm533_vm2, %v1943_v37 }
 0xb25   : > { %2543 = vmatmul.msk.f32.vlgmr.msrb.gmra.mxu3 %vm533_vm2, %v1941_v2 }
 0xb58   : > { %v1664_v38 = vpop.f32.mrf.mxu1 }
 0xb59   : > { %2529 = vmatmul.msk.f32.gmra.mxu2 %vm533_vm2, %v1664_v38 }
 0xb60   : > { %v1778_v39 = vpop.f32.mrf.mxu1 }
 0xb61   : > { %v1782_v40 = vmul.f32 0.35355338, %v1778_v39 }
 0xb63   : > { %v1784_v41 = vadd.f32 %v1782_v40, %v3184_v45 }
 0xb65   : > { %v1788_v42 = vsel %vm533_vm2, %v1784_v41, -inf }
 0xb66   : > { %1789 = vmax.xlane.f32.xlu0 %v1788_v42 }
 0xb7a   : > { %v1974_v43 = vpop.xlane.xlu2 %1973 }
 0xb7b   : > { %v1978_v44 = vsub.f32 %v1970_v22, %v1974_v43 }
 0xb7d   : > { %v1980_v46 = vmul.f32 1.442695, %v1978_v44 }
 0xb7f   : > { %2708 = vpow2.f32 %v1980_v46  ;;  %v1690_v46 = vpop.f32.mrf.mxu2 }
 0xb85   : > { %v2709_v48 = vpop.eup %2708 }
 0xb86   : > { %v1984_v49 = vsel %vm533_vm2, %v2709_v48, 0.0 }
 0xb87   : > { %1985 = vadd.xlane.f32.xlu0 %v1984_v49  ;;  %v1720_v49 = vadd.f32 %v3224_v10, %v1690_v46 }
 0xba0   : > { %v1854_v50 = vpop.f32.mrf.mxu3 }
 0xba1   : > { %2538 = vmatmul.msk.f32.vlgmr.msrb.gmra.mxu2 %vm533_vm2, %v1854_v50 }
 0xba8   : > { %v1965_v51 = vpop.f32.mrf.mxu3 }
 0xba9   : > { %v1969_v52 = vmul.f32 0.35355338, %v1965_v51 }
 0xbab   : > { %v1971_v53 = vadd.f32 %v1969_v52, %v3184_v45 }
 0xbad   : > { %v1975_v54 = vsel %vm533_vm2, %v1971_v53, -inf }
 0xbae   : > { %1976 = vmax.xlane.f32.xlu1 %v1975_v54 }
 0xbd9   : > { %v1790_v55 = vpop.xlane.xlu0 %1789 }
 0xbda   : > { %v1792_v62 = vsub.f32 %v1784_v41, %v1790_v55  ;;  %v480_v41 = vld [vmem:[%s2975_s14 + $0x78] sm:$0xff] }
 0xbdb   : > { %2089 = vmatpush.msra.mxu3 %v480_v41 }
 0xbdc   : > { %v1795_v56 = vmul.f32 1.442695, %v1792_v62  ;;  %v1693_v47 = vpop.f32.mrf.mxu2 }
 0xbdd   : > { %v1723_v62 = vadd.f32 %v3226_v19, %v1693_v47 }
 0xbde   : > { %2710 = vpow2.f32 %v1795_v56 }
 0xbe4   : > { %v2711_v18 = vpop.eup %2710 }
 0xbe5   : > { %v1800_v58 = vsel %vm533_vm2, %v2711_v18, 0.0 }
 0xbe6   : > { %1801 = vadd.xlane.f32.xlu2 %v1800_v58 }
 0xbfa   : > { %v1986_v45 = vpop.xlane.xlu0 %1985 }
 0xbfb   : > { %v2001_v21 = vand.u32 2147483648, %v1986_v45  ;;  %vm1995_vm11 = vweird.f32 %v1986_v45  ;;  %v1999_v23 = vand.u32 2147483647, %v1986_v45 }
 0xbfd   : > { %v2002_v26 = vor.u32 1.1754944e-38, %v2001_v21  ;;  %vm2000_vm13 = vcmp.eq.f32.partialorder %v1999_v23, 8.507059e+37  ;;  %v2644_v21 = vld [vmem:[%s2990_s26 + $0x2] ss:$0 sm:$0xff] }
 0xc21   : > { %v1977_v7 = vpop.xlane.xlu1 %1976 }
 0xc22   : > { %v1979_v59 = vsub.f32 %v1971_v53, %v1977_v7 }
 0xc24   : > { %v1982_v60 = vmul.f32 1.442695, %v1979_v59 }
 0xc26   : > { %2712 = vpow2.f32 %v1982_v60 }
 0xc27   : > { %2714 = vrcp.f32 %v1986_v45 }
 0xc2c   : > { %v2713_v61 = vpop.eup %2712 }
 0xc2d   : > { %v1987_v63 = vsel %vm533_vm2, %v2713_v61, 0.0  ;;  %v2715_v0 = vpop.eup %2714 }
 0xc2e   : > { %1988 = vadd.xlane.f32.xlu1 %v1987_v63  ;;  %v1991_v3 = vmul.f32 %v2715_v0, %v1986_v45  ;;  %vm1996_vm9 = vweird.f32 %v2715_v0 }
 0xc2f   : > { %vm1997_vm12 = vmor %vm1995_vm11, %vm1996_vm9 }
 0xc30   : > { %v1992_v5 = vsub.f32 1.0, %v1991_v3  ;;  %v484_v3 = vld [vmem:[%s2980_s0 + $0x18] sm:$0xff] }
 0xc32   : > { %v1993_v12 = vmul.f32 %v2715_v0, %v1992_v5  ;;  %v482_v5 = vld [vmem:[%s2980_s0 + $0x8] sm:$0xff] }
 0xc34   : > { %v1994_v13 = vadd.f32 %v2715_v0, %v1993_v12 }
 0xc36   : > { %v1998_v25 = vsel %vm1997_vm12, %v2715_v0, %v1994_v13 }
 0xc37   : > { %v2003_v28 = vsel %vm2000_vm13, %v2002_v26, %v1998_v25 }
 0xc38   : > { %v2004_v29 = vmul.f32 %v2709_v48, %v2003_v28  ;;  %v1904_v48 = vpop.f32.mrf.mxu2  ;;  %v488_v28 = vld [vmem:[%s2980_s0 + $0x38] sm:$0xff] }
 0xc39   : > { %v1910_v50 = vadd.f32 %v1904_v48, %v1720_v49 }
 0xc59   : > { %v1802_v33 = vpop.xlane.xlu2 %1801 }
 0xc5a   : > { %2716 = vrcp.f32 %v1802_v33  ;;  %v1829_v9 = vand.u32 2147483648, %v1802_v33  ;;  %v1827_v15 = vand.u32 2147483647, %v1802_v33  ;;  %vm1823_vm7 = vweird.f32 %v1802_v33 }
 0xc5c   : > { %v1830_v17 = vor.u32 1.1754944e-38, %v1829_v9  ;;  %vm1828_vm10 = vcmp.eq.f32.partialorder %v1827_v15, 8.507059e+37 }
 0xc60   : > { %v2717_v4 = vpop.eup %2716 }
 0xc61   : > { %v1819_v8 = vmul.f32 %v2717_v4, %v1802_v33  ;;  %vm1824_vm6 = vweird.f32 %v2717_v4 }
 0xc62   : > { %vm1825_vm8 = vmor %vm1823_vm7, %vm1824_vm6  ;;  %vm2186_vm6 = vcmask 523264  }
 0xc63   : > { %v1820_v11 = vsub.f32 1.0, %v1819_v8  ;;  %v481_v8 = vld [vmem:[%s2980_s0] sm:$0xff]  ;;  %2550 = vmatpush.xpose.msk.msra.mxu2 %vm2186_vm6, %v488_v28 }
 0xc65   : > { %v1821_v14 = vmul.f32 %v2717_v4, %v1820_v11 }
 0xc67   : > { %v1822_v16 = vadd.f32 %v2717_v4, %v1821_v14 }
 0xc69   : > { %v1826_v20 = vsel %vm1825_vm8, %v2717_v4, %v1822_v16  ;;  %v483_v4 = vld [vmem:[%s2980_s0 + $0x10] sm:$0xff] }
 0xc6a   : > { %v1831_v22 = vsel %vm1828_vm10, %v1830_v17, %v1826_v20 }
 0xc6b   : > { %v1832_v24 = vmul.f32 %v2711_v18, %v1831_v22 }
 0xc6d   : > { %2537 = vmatmul.msk.f32.vlgmr.msrb.gmra.mxu1 %vm533_vm2, %v1832_v24  ;;  %v2645_v24 = vld [vmem:[%s2990_s26 + $0x3] ss:$0 sm:$0xff] }
 0xc6e   : > { %2172 = vmatpush.msrb.mxu1 %v484_v3 }
 0xc70   : > { %2173 = vmatpush.msrb.mxu1 %v483_v4 }
 0xc72   : > { %2174 = vmatpush.msrb.mxu1 %v482_v5 }
 0xc74   : > { %2175 = vmatpush.msrb.mxu1 %v481_v8 }
 0xc75   : > { %2544 = vmatmul.msk.f32.vlgmr.msra.gmra.mxu1 %vm533_vm2, %v2004_v29  ;;  %v487_v29 = vld [vmem:[%s2980_s0 + $0x30] sm:$0xff] }
 0xc76   : > { %2551 = vmatpush.xpose.msk.msra.mxu2 %vm2186_vm6, %v487_v29 }
 0xca1   : > { %v1989_v31 = vpop.xlane.xlu1 %1988 }
 0xca2   : > { %2718 = vrcp.f32 %v1989_v31  ;;  %v2016_v35 = vand.u32 2147483648, %v1989_v31  ;;  %v2014_v30 = vand.u32 2147483647, %v1989_v31  ;;  %vm2010_vm15 = vweird.f32 %v1989_v31 }
 0xca4   : > { %v2017_v2 = vor.u32 1.1754944e-38, %v2016_v35  ;;  %vm2015_vm3 = vcmp.eq.f32.partialorder %v2014_v30, 8.507059e+37 }
 0xca8   : > { %v2719_v32 = vpop.eup %2718 }
 0xca9   : > { %v2006_v57 = vmul.f32 %v2719_v32, %v1989_v31  ;;  %vm2011_vm14 = vweird.f32 %v2719_v32 }
 0xcaa   : > { %vm2012_vm0 = vmor %vm2010_vm15, %vm2011_vm14 }
 0xcab   : > { %v2007_v6 = vsub.f32 1.0, %v2006_v57 }
 0xcad   : > { %v2008_v36 = vmul.f32 %v2719_v32, %v2007_v6  ;;  %v486_v6 = vld [vmem:[%s2980_s0 + $0x28] sm:$0xff] }
 0xcae   : > { %2552 = vmatpush.xpose.msk.msra.mxu2 %vm2186_vm6, %v486_v6 }
 0xcaf   : > { %v2009_v37 = vadd.f32 %v2719_v32, %v2008_v36 }
 0xcb1   : > { %v2013_v38 = vsel %vm2012_vm0, %v2719_v32, %v2009_v37 }
 0xcb2   : > { %v2018_v39 = vsel %vm2015_vm3, %v2017_v2, %v2013_v38 }
 0xcb3   : > { %v2019_v40 = vmul.f32 %v2713_v61, %v2018_v39 }
 0xcb5   : > { %2545 = vmatmul.msk.f32.vlgmr.msra.gmra.mxu0 %vm533_vm2, %v2019_v40 }
 0xcea   : > { %v1878_v42 = vpop.f32.mrf.mxu1 }
 0xceb   : > { %2539 = vmatmul.msk.f32.gmra.mxu2 %vm533_vm2, %v1878_v42 }
 0xcf2   : > { %v2041_v43 = vpop.f32.mrf.mxu1 }
 0xcf3   : > { %2546 = vmatmul.msk.f32.vlgmr.msra.gmra.mxu3 %vm533_vm2, %v2041_v43  ;;  %v485_v43 = vld [vmem:[%s2980_s0 + $0x20] sm:$0xff] }
 0xcf4   : > { %2553 = vmatpush.xpose.msk.msra.mxu2 %vm2186_vm6, %v485_v43 }
 0xd32   : > { %v2065_v44 = vpop.f32.mrf.mxu0 }
 0xd33   : > { %2547 = vmatmul.msk.f32.gmra.mxu3 %vm533_vm2, %v2065_v44  ;;  %v2646_v44 = vld [vmem:[%s454_s2] ss:$0 sm:$0xff] }
 0xd6e   : > { %v1907_v55 = vpop.f32.mrf.mxu2 }
 0xd6f   : > { %v1911_v56 = vadd.f32 %v1907_v55, %v1723_v62 }
 0xd76   : > { %v2091_v51 = vpop.f32.mrf.mxu3 }
 0xd77   : > { %v2097_v52 = vadd.f32 %v2091_v51, %v1910_v50 }
 0xd79   : > { %v2099_v53 = vadd.f32 %v2097_v52, %v3131_v1  ;;  %v2647_v52 = vld [vmem:[%s2990_s26 + $0x6] ss:$0 sm:$0xff] }
 0xd7b   : > { %v2101_v54 = vsel %vm503_vm1, %v2099_v53, 0.0 }
 0xd7c   : > { %2102 = vadd.xlane.f32.xlu2 %v2101_v54 }
 0xdb6   : > { %v2094_v18 = vpop.f32.mrf.mxu3 }
 0xdb7   : > { %v2098_v58 = vadd.f32 %v2094_v18, %v1911_v56 }
 0xdb9   : > { %v2100_v7 = vadd.f32 %v2098_v58, %v3163_v27 }
 0xdbb   : > { %v2104_v59 = vsel %vm503_vm1, %v2100_v7, 0.0 }
 0xdbc   : > { %2105 = vadd.xlane.f32.xlu0 %v2104_v59 }
 0xdef   : > { %v2103_v10 = vpop.xlane.xlu2 %2102 }
 0xdf0   : > { %v2107_v1 = vmul.f32 %v2103_v10, %v3113_v34 }
 0xdf2   : > { %v2109_v60 = vsub.f32 %v2099_v53, %v2107_v1 }
 0xdf4   : > { %v2111_v61 = vmul.f32 %v2109_v60, %v2109_v60 }
 0xdf6   : > { %v2113_v63 = vsel %vm503_vm1, %v2111_v61, 0.0 }
 0xdf7   : > { %2114 = vadd.xlane.f32.xlu1 %v2113_v63 }
 0xe2f   : > { %v2106_v19 = vpop.xlane.xlu0 %2105 }
 0xe30   : > { %v2108_v45 = vmul.f32 %v2106_v19, %v3113_v34 }
 0xe32   : > { %v2110_v33 = vsub.f32 %v2100_v7, %v2108_v45 }
 0xe34   : > { %v2112_v0 = vmul.f32 %v2110_v33, %v2110_v33 }
 0xe36   : > { %v2116_v27 = vsel %vm503_vm1, %v2112_v0, 0.0 }
 0xe37   : > { %2117 = vadd.xlane.f32.xlu2 %v2116_v27 }
 0xe6a   : > { %v2115_v11 = vpop.xlane.xlu1 %2114 }
 0xe6b   : > { %v2119_v9 = vmul.f32 %v2115_v11, %v3113_v34 }
 0xe6d   : > { %v2121_v12 = vadd.f32 1e-05, %v2119_v9 }
 0xe6f   : > { %2720 = vrsqrt.f32 %v2121_v12  ;;  %vm2129_vm4 = vweird.f32 %v2121_v12 }
 0xe75   : > { %v2721_v14 = vpop.eup %2720 }
 0xe76   : > { %v2124_v15 = vmul.f32 %v2721_v14, %v2121_v12  ;;  %vm2130_vm2 = vweird.f32 %v2721_v14 }
 0xe77   : > { %vm2131_vm5 = vmor %vm2129_vm4, %vm2130_vm2 }
 0xe78   : > { %v2125_v16 = vmul.f32 %v2721_v14, %v2124_v15  ;;  %v2648_v15 = vld [vmem:[%s2990_s26 + $0x4] ss:$0 sm:$0xff] }
 0xe7a   : > { %v2126_v17 = vmul.f32 0.5, %v2125_v16 }
 0xe7c   : > { %v2127_v13 = vsub.f32 1.5, %v2126_v17  ;;  %v2649_v17 = vld [vmem:[%s2990_s26 + $0x5] ss:$0 sm:$0xff] }
 0xe7e   : > { %v2128_v20 = vmul.f32 %v2721_v14, %v2127_v13 }
 0xe80   : > { %v2132_v22 = vsel %vm2131_vm5, %v2721_v14, %v2128_v20 }
 0xe81   : > { %v2143_v23 = vmul.f32 %v2132_v22, %v2109_v60 }
 0xe83   : > { %v2146_v25 = vmul.f32 %v2644_v21, %v2143_v23 }
 0xe85   : > { %v2149_v26 = vadd.f32 %v2645_v24, %v2146_v25 }
 0xe87   : > { %2548 = vmatmul.msk.f32.vlgmr.msrb.gmra.mxu1 %vm503_vm1, %v2149_v26 }
 0xeaa   : > { %v2118_v31 = vpop.xlane.xlu2 %2117 }
 0xeab   : > { %v2120_v32 = vmul.f32 %v2118_v31, %v3113_v34 }
 0xead   : > { %v2122_v57 = vadd.f32 1e-05, %v2120_v32 }
 0xeaf   : > { %2722 = vrsqrt.f32 %v2122_v57  ;;  %vm2139_vm8 = vweird.f32 %v2122_v57 }
 0xeb5   : > { %v2723_v35 = vpop.eup %2722 }
 0xeb6   : > { %v2134_v36 = vmul.f32 %v2723_v35, %v2122_v57  ;;  %vm2140_vm7 = vweird.f32 %v2723_v35 }
 0xeb7   : > { %vm2141_vm9 = vmor %vm2139_vm8, %vm2140_vm7 }
 0xeb8   : > { %v2135_v30 = vmul.f32 %v2723_v35, %v2134_v36 }
 0xeba   : > { %v2136_v37 = vmul.f32 0.5, %v2135_v30 }
 0xebc   : > { %v2137_v2 = vsub.f32 1.5, %v2136_v37 }
 0xebe   : > { %v2138_v38 = vmul.f32 %v2723_v35, %v2137_v2 }
 0xec0   : > { %v2142_v39 = vsel %vm2141_vm9, %v2723_v35, %v2138_v38 }
 0xec1   : > { %v2144_v40 = vmul.f32 %v2142_v39, %v2110_v33 }
 0xec3   : > { %v2147_v41 = vmul.f32 %v2644_v21, %v2144_v40 }
 0xec5   : > { %v2150_v42 = vadd.f32 %v2645_v24, %v2147_v41 }
 0xec7   : > { %2549 = vmatmul.msk.f32.gmra.mxu1 %vm503_vm1, %v2150_v42 }
 0xf04   : > { %v2177_v46 = vpop.f32.mrf.mxu1 }
 0xf05   : > { %v2178_v47 = vadd.f32 %v2646_v44, %v2177_v46 }
 0xf07   : > { %v2183_v48 = vmax.f32 %v2178_v47, 0.0 }
 0xf09   : > { %2554 = vmatmul.msk.f32.vlgmr.msra.gmra.mxu2 %vm2186_vm6, %v2183_v48 }
 0xf44   : > { %v2180_v49 = vpop.f32.mrf.mxu1 }
 0xf45   : > { %v2181_v50 = vadd.f32 %v2646_v44, %v2180_v49 }
 0xf47   : > { %v2184_v51 = vmax.f32 %v2181_v50, 0.0 }
 0xf49   : > { %2555 = vmatmul.msk.f32.gmra.mxu2 %vm2186_vm6, %v2184_v51 }
 0xf8c   : > { %v2222_v53 = vpop.f32.mrf.mxu2 }
 0xf8d   : > { %v2223_v54 = vadd.f32 %v2647_v52, %v2222_v53 }
 0xf8f   : > { %v2228_v55 = vadd.f32 %v2223_v54, %v2149_v26 }
 0xf91   : > { %v2230_v62 = vsel %vm503_vm1, %v2228_v55, 0.0 }
 0xf92   : > { %2231 = vadd.xlane.f32.xlu0 %v2230_v62 }
 0xfcc   : > { %v2225_v56 = vpop.f32.mrf.mxu2 }
 0xfcd   : > { %v2226_v18 = vadd.f32 %v2647_v52, %v2225_v56 }
 0xfcf   : > { %v2229_v58 = vadd.f32 %v2226_v18, %v2150_v42 }
 0xfd1   : > { %v2233_v7 = vsel %vm503_vm1, %v2229_v58, 0.0 }
 0xfd2   : > { %2234 = vadd.xlane.f32.xlu1 %v2233_v7 }
0x1005   : > { %v2232_v59 = vpop.xlane.xlu0 %2231 }
0x1006   : > { %v2236_v10 = vmul.f32 %v2232_v59, %v3113_v34 }
0x1008   : > { %v2238_v1 = vsub.f32 %v2228_v55, %v2236_v10 }
0x100a   : > { %v2240_v60 = vmul.f32 %v2238_v1, %v2238_v1 }
0x100c   : > { %v2242_v61 = vsel %vm503_vm1, %v2240_v60, 0.0 }
0x100d   : > { %2243 = vadd.xlane.f32.xlu2 %v2242_v61 }
0x1045   : > { %v2235_v63 = vpop.xlane.xlu1 %2234 }
0x1046   : > { %v2237_v19 = vmul.f32 %v2235_v63, %v3113_v34 }
0x1048   : > { %v2239_v45 = vsub.f32 %v2229_v58, %v2237_v19 }
0x104a   : > { %v2241_v33 = vmul.f32 %v2239_v45, %v2239_v45 }
0x104c   : > { %v2245_v0 = vsel %vm503_vm1, %v2241_v33, 0.0 }
0x104d   : > { %2246 = vadd.xlane.f32.xlu0 %v2245_v0 }
0x1080   : > { %v2244_v27 = vpop.xlane.xlu2 %2243 }
0x1081   : > { %v2248_v3 = vmul.f32 %v2244_v27, %v3113_v34 }
0x1083   : > { %v2250_v4 = vadd.f32 1e-05, %v2248_v3 }
0x1085   : > { %2724 = vrsqrt.f32 %v2250_v4  ;;  %vm2258_vm11 = vweird.f32 %v2250_v4 }
0x108b   : > { %v2725_v5 = vpop.eup %2724 }
0x108c   : > { %v2253_v8 = vmul.f32 %v2725_v5, %v2250_v4  ;;  %vm2259_vm10 = vweird.f32 %v2725_v5 }
0x108d   : > { %vm2260_vm12 = vmor %vm2258_vm11, %vm2259_vm10 }
0x108e   : > { %v2254_v11 = vmul.f32 %v2725_v5, %v2253_v8 }
0x1090   : > { %v2255_v9 = vmul.f32 0.5, %v2254_v11 }
0x1092   : > { %v2256_v12 = vsub.f32 1.5, %v2255_v9 }
0x1094   : > { %v2257_v14 = vmul.f32 %v2725_v5, %v2256_v12 }
0x1096   : > { %v2261_v16 = vsel %vm2260_vm12, %v2725_v5, %v2257_v14 }
0x1097   : > { %v2272_v13 = vmul.f32 %v2261_v16, %v2238_v1 }
0x1099   : > { %v2275_v20 = vmul.f32 %v2648_v15, %v2272_v13 }
0x109b   : > { %v2278_v21 = vadd.f32 %v2649_v17, %v2275_v20 }
0x109d   : > { %2280 = vst.msk [vmem:[#allocation2] sm:$0xff] %vm503_vm1, %v2278_v21 }
0x10c0   : > { %v2247_v22 = vpop.xlane.xlu0 %2246 }
0x10c1   : > { %v2249_v23 = vmul.f32 %v2247_v22, %v3113_v34 }
0x10c3   : > { %v2251_v24 = vadd.f32 1e-05, %v2249_v23 }
0x10c5   : > { %2726 = vrsqrt.f32 %v2251_v24  ;;  %vm2268_vm14 = vweird.f32 %v2251_v24 }
0x10cb   : > { %v2727_v25 = vpop.eup %2726 }
0x10cc   : > { %v2263_v26 = vmul.f32 %v2727_v25, %v2251_v24  ;;  %vm2269_vm13 = vweird.f32 %v2727_v25 }
0x10cd   : > { %vm2270_vm15 = vmor %vm2268_vm14, %vm2269_vm13 }
0x10ce   : > { %v2264_v28 = vmul.f32 %v2727_v25, %v2263_v26 }
0x10d0   : > { %v2265_v29 = vmul.f32 0.5, %v2264_v28 }
0x10d2   : > { %v2266_v31 = vsub.f32 1.5, %v2265_v29 }
0x10d4   : > { %v2267_v32 = vmul.f32 %v2727_v25, %v2266_v31 }
0x10d6   : > { %v2271_v57 = vsel %vm2270_vm15, %v2727_v25, %v2267_v32 }
0x10d7   : > { %v2273_v6 = vmul.f32 %v2271_v57, %v2239_v45 }
0x10d9   : > { %v2276_v35 = vmul.f32 %v2648_v15, %v2273_v6  ;;  %2285 = sbr.rel (%p2556_p1) target bundleno = 4320 (0x10e0), region = 60 }
0x10db   : > { %v2279_v36 = vadd.f32 %v2649_v17, %v2276_v35 }
0x10dd   : > { %2281 = vst.msk [vmem:[#allocation2 + $0x8] sm:$0xff] %vm503_vm1, %v2279_v36 }
0x10de   : > { %2286 = vst.msk [vmem:[%s2992_s3] sm:$0xff] %vm503_vm1, %v2278_v21 }
0x10df   : > { %2287 = vst.msk [vmem:[%s2992_s3 + $0x8] sm:$0xff] %vm503_vm1, %v2279_v36 }
0x10e0 PF: > { %s2564_s0 = sshll.u32 %s2810_s9, 4  ;;  %s2301_s25 = sshll.u32 %s2992_s3, 4  ;;  %s2302_s25 = int_to_ptr.vmem [resolvable:$true] %s2301_s25 }
0x10e1   : > { %s2300_s24 = scalar_lea.hbm %s3356_s8, %s2564_s0  ;;  %s3385_s19 = sand.u32 1, %s2798_s28  }
0x10e2   : > { %s2303_s30 = sshll.u32 %s2300_s24, 4  ;;  %s2289_s23 = scalar_lea.sflag [#allocation4], %s3385_s19  ;;  %s2304_s30 = int_to_ptr.hbm [resolvable:$true] %s2303_s30 }
0x10e3   : > { %s2742_s13 = sshra.s32 %s2304_s30, 4  ;;  %s2748_s9 = scalar_lea.hbm %s3356_s8, 32  ;;  %s2743_s13 = int_to_ptr.hbm [resolvable:$true] %s2742_s13 }
0x10e4   : > { %s2744_s14 = scalar_lea.hbm %s2743_s13, 16  ;;  %p2749_p6 = scmp.lt.s32.totalorder %s2743_s13, %s3356_s8 }
0x10e5   : > { %p2745_p2 = scmp.ne.s32.totalorder %s2743_s13, %s2744_s14  ;;  %p2750_p7 = scmp.lt.s32.totalorder %s2748_s9, %s2744_s14 }
0x10e7   : > { %p2746_p4 = pnand %p2745_p2, %p2924_p3  ;;  %p2751_p8 = por %p2750_p7, %p2749_p6 }
0x10e9   : > { %p2747_p5 = pneg %p2746_p4 }
0x10eb   : > { %p2752_p10 = pnand %p2751_p8, %p2747_p5 }
0x10ed   : > { %2755 = shalt.err (!%p2752_p10)
}
0x10ee   : > { %s2828_s3 = smov 128   ;;  %s2829_s29 = smov 8  }
0x10ef   : > { %2565 = dma.vmem_to_hbm [thread:$0]  (%p2924_p3), %s2302_s25, 256, %s2304_s30, %s2289_s23, %s2828_s3, %s2828_s3, %s2829_s29  }
0x10f0 PF: > { %s3386_s21 = sld [smem:[#allocation10_spill]] }
0x10f1   : > { %s3387_s26 = sld [smem:[#allocation6_spill]] }
0x10f6   : > { %p2571_p11 = scmp.ge.s32.totalorder %s3386_s21, 2 }
0x10f7   : > { %s2318_s27 = sand.u32 1, %s3387_s26  }
0x10f8   : > { %p2568_p12 = pnand %p2571_p11, %p2934_p9  ;;  %s2319_s10 = scalar_lea.sflag [#allocation4], %s2318_s27 }
0x10fa   : > { %p2569_p13 = pneg %p2568_p12 }
0x10fc   : > { %2789 = dma.done.wait (%p2569_p13), %s2319_s10, 256  }
0x10fd   : > { %2791 = vsyncadd (%p2569_p13), %s2319_s10, 4294967040  ;;  %s21_s12 = sadd.s32 1, %s3386_s21   ;;  %s3389_s15 = sld [smem:[#allocation7_spill]] }
0x10fe   : > { %p18_p0 = scmp.ge.s32.totalorder %s21_s12, 6   ;;  %s3390_s29 = sld [smem:[#allocation14_spill]] }
0x10ff   : > { %s3391_s30 = sld [smem:[#allocation8_spill]]  ;;  %s3395_s27 = smov %s2798_s28 }
0x1100   : > { %s3392_s9 = sld [smem:[#allocation9_spill]]  ;;  %20 = sbr.rel (!%p18_p0) target bundleno = 10 (0xa), region = 116 }
0x1101   : > { %s3393_s10 = sld [smem:[#allocation11_spill]] }
0x1102   : > { %s3394_s11 = sld [smem:[#allocation12_spill]] }
0x1103   : > { %s3396_s28 = smov %s3389_s15 }
0x1105   :  { %2325 = vsyncpa [#allocation4], 1 }
0x1106   :  { %2327 = vsyncpa [#allocation4 + $0x1], 1 }

</bundles_post_ra>
